<compile_context>
chip_gen: v7x
topology: tpu7x:2x2x1
jax: 0.10.0
libtpu: 0.0.40
codegen_flags: <defaults>
</compile_context>

<pallas_src>
import functools

import numpy as np
import jax
import jax.numpy as jnp
from jax.experimental import pallas as pl
from jax.experimental.pallas import tpu as pltpu


def _relative_position_index(L, W1, W2):
    """Reproduces the torch buffer `relative_position_index` exactly."""
    coords = np.stack(
        np.meshgrid(np.arange(L), np.arange(W1), np.arange(W2), indexing="ij")
    )                                           # (3, L, W1, W2)
    coords_flatten = coords.reshape(3, -1)      # (3, N)
    rel = coords_flatten[:, :, None] - coords_flatten[:, None, :]
    rel = rel.transpose(1, 2, 0).astype(np.int64)   # (N, N, 3)
    rel[:, :, 0] += L - 1
    rel[:, :, 1] += W1 - 1
    rel[:, :, 2] += W2 - 1
    rel[:, :, 0] *= (2 * W1 - 1) * (2 * W2 - 1)
    rel[:, :, 1] *= 2 * W2 - 1
    return rel.sum(-1)                          # (N, N)


def hgt_attention_kernel(x_ref, wqkv_ref, bqkv_ref, bias_ref, wo_ref, o_ref,
                         qkv_ref, *, L, WW, H, dh):
    """TB windows per grid step.

    x_ref    : (TB, N, D) bf16   tokens (agent-major: n = l*WW + w)
    wqkv_ref : (L, D, 3D) bf16   fused per-agent [q|k|v] weights (x @ W),
                                 attention scale folded into the q columns
    bqkv_ref : (L, 3D)   f32     fused biases (scale folded into q part)
    bias_ref : (H, N, N) bf16    relative position bias (pre-gathered)
    wo_ref   : (H, dh, D) bf16   output projection split per head (no bias)
    o_ref    : (TB, N, D)
    qkv_ref  : (TB, N, 3D) bf16  VMEM scratch holding the fused projections
    """
    TB, N, D = x_ref.shape
    cdt = wqkv_ref.dtype                        # bf16 compute dtype for MXU

    # ---- per-agent fused QKV projection (static sublane slices, no transposes)
    for l in range(L):
        x_l = x_ref[:, l * WW:(l + 1) * WW, :].astype(cdt)       # (TB, WW, D)
        qkv_l = jax.lax.dot_general(                             # (TB, WW, 3D) f32
            x_l, wqkv_ref[l],
            dimension_numbers=(((2,), (0,)), ((), ())),
            preferred_element_type=jnp.float32)
        qkv_l = qkv_l + bqkv_ref[l][None, None, :]
        qkv_ref[:, l * WW:(l + 1) * WW, :] = qkv_l.astype(cdt)

    # ---- per-head attention; output projection accumulated into one f32 slab
    acc = jnp.zeros((TB * N, D), jnp.float32)
    for h in range(H):
        q_h = qkv_ref[:, :, h * dh:(h + 1) * dh]                 # (TB, N, dh) bf16
        k_h = qkv_ref[:, :, D + h * dh:D + (h + 1) * dh]
        v_h = qkv_ref[:, :, 2 * D + h * dh:2 * D + (h + 1) * dh]

        sim = jax.lax.dot_general(                               # (TB, N, N) f32
            q_h, k_h, dimension_numbers=(((2,), (2,)), ((0,), (0,))),
            preferred_element_type=jnp.float32)
        sim = sim + bias_ref[h].astype(jnp.float32)[None, :, :]
        sim = sim - jnp.max(sim, axis=-1, keepdims=True)
        p = jnp.exp(sim)                                         # f32 softmax
        attn = (p * pl.reciprocal(jnp.sum(p, axis=-1, keepdims=True),
                                  approx=True)).astype(cdt)

        out_h = jax.lax.dot_general(                             # (TB, N, dh) f32
            attn, v_h, dimension_numbers=(((2,), (1,)), ((0,), (0,))),
            preferred_element_type=jnp.float32)

        acc = acc + jax.lax.dot_general(                         # (TB*N, D) f32
            out_h.reshape(TB * N, dh).astype(cdt), wo_ref[h],
            dimension_numbers=(((1,), (0,)), ((), ())),
            preferred_element_type=jnp.float32)

    o_ref[...] = acc.reshape(TB, N, D).astype(o_ref.dtype)


def hgt_attention_forward(x, params, *, dim_head, type_id=0,
                          max_windows_per_block=4):
    """x: (B, L, X, Y, W1, W2, D) -> same shape."""
    B, L, X, Y, W1, W2, D = x.shape
    assert D % dim_head == 0
    H = D // dim_head
    dh = dim_head
    WW = W1 * W2
    N = L * WW
    BW = B * X * Y
    scale = float(dh) ** -0.5

    # types = [0] + (agent_size - 1) * [type]  (same for every batch element)
    agent_types = np.array([0] + [type_id] * (L - 1), dtype=np.int32)

    # fused per-agent QKV weights, pre-transposed so the kernel does x @ W;
    # attention scale folded into the q columns/bias (zero recurring cost).
    wq = jnp.transpose(params["q_w"][agent_types], (0, 2, 1)) * scale
    wk = jnp.transpose(params["k_w"][agent_types], (0, 2, 1))
    wv = jnp.transpose(params["v_w"][agent_types], (0, 2, 1))
    w_qkv = jnp.concatenate([wq, wk, wv], axis=-1).astype(jnp.bfloat16)  # (L,D,3D)
    b_qkv = jnp.concatenate(
        [params["q_b"][agent_types] * scale,
         params["k_b"][agent_types],
         params["v_b"][agent_types]], axis=-1).astype(jnp.float32)       # (L,3D)
    # output projection split per head: y = sum_h out_h @ wo[h]  (no bias in ref)
    wo = params["out_w"].T.reshape(H, dh, D).astype(jnp.bfloat16)        # (H,dh,D)

    # relative position bias gather (embedding lookup = wrapper glue); bf16 in
    # HBM/VMEM, upcast inside the kernel when added to the f32 sim.
    rpi = _relative_position_index(L, W1, W2)                            # (N,N)
    bias = params["rel_pos_table"][rpi]                                  # (N,N,H)
    bias = jnp.transpose(bias, (2, 0, 1)).astype(jnp.bfloat16)           # (H,N,N)

    # rearrange 'b l x y w1 w2 d -> (b x y) (l w1 w2) d'; bf16 halves the
    # dominant HBM stream (kernel casts to bf16 before every matmul anyway).
    x_seq = jnp.transpose(x, (0, 2, 3, 1, 4, 5, 6)).reshape(BW, N, D)
    x_seq = x_seq.astype(jnp.bfloat16)

    # windows per grid step: biggest tile that fits VMEM; only force >=2 grid
    # steps on multi-TensorCore chips (v4/v5p/v7x) so both cores get work.
    try:
        kind = jax.devices()[0].device_kind.lower()
    except Exception:  # pragma: no cover - defensive
        kind = ""
    multi_tc = any(tag in kind for tag in ("v7", "v4", "v5p"))
    tb = max(1, min(max_windows_per_block, BW))
    if multi_tc and BW >= 2:
        tb = min(tb, pl.cdiv(BW, 2))
    num_blocks = pl.cdiv(BW, tb)
    bw_pad = num_blocks * tb
    if bw_pad != BW:
        x_seq = jnp.pad(x_seq, ((0, bw_pad - BW), (0, 0), (0, 0)))

    out_dtype = x.dtype
    out_isize = np.dtype(out_dtype).itemsize

    # explicit VMEM limit from the per-step footprint (with headroom)
    est = (
        2 * tb * N * D * 2                       # x block (double-buffered, bf16)
        + 2 * tb * N * D * out_isize             # out block (double-buffered)
        + 2 * (L * D * 3 * D * 2 + L * 3 * D * 4
               + H * N * N * 2 + H * dh * D * 2)  # constant operands (dbl-buf)
        + tb * N * 3 * D * 2                     # qkv scratch (bf16)
        + 4 * tb * N * N * 4                     # sim / p / attn live f32
        + 2 * tb * N * D * 4                     # acc + out_h live f32
    )
    vmem_limit = int(min(max(2 * est, 16 * 2**20), 64 * 2**20))

    kernel = functools.partial(hgt_attention_kernel, L=L, WW=WW, H=H, dh=dh)

    # NOTE: weight/bias operands use a constant index_map so they DMA only
    # once; at production sizes (D multiple of 128) the x/out blocks are
    # lane-dense.
    out_seq = pl.pallas_call(
        kernel,
        out_shape=jax.ShapeDtypeStruct((bw_pad, N, D), out_dtype),
        grid_spec=pltpu.PrefetchScalarGridSpec(
            num_scalar_prefetch=0,
            grid=(num_blocks,),
            in_specs=[
                pl.BlockSpec((tb, N, D), lambda i: (i, 0, 0)),       # x windows
                pl.BlockSpec((L, D, 3 * D), lambda i: (0, 0, 0)),    # w_qkv
                pl.BlockSpec((L, 3 * D), lambda i: (0, 0)),          # b_qkv
                pl.BlockSpec((H, N, N), lambda i: (0, 0, 0)),        # rel pos bias
                pl.BlockSpec((H, dh, D), lambda i: (0, 0, 0)),       # wo (per head)
            ],
            out_specs=pl.BlockSpec((tb, N, D), lambda i: (i, 0, 0)),
            scratch_shapes=[pltpu.VMEM((tb, N, 3 * D), jnp.bfloat16)],
        ),
        compiler_params=pltpu.CompilerParams(
            dimension_semantics=("parallel",),
            vmem_limit_bytes=vmem_limit),
    )(x_seq, w_qkv, b_qkv, bias, wo)

    # drop padding, rearrange '(b x y) (l w1 w2) d -> b l x y w1 w2 d'
    out = out_seq[:BW].reshape(B, X, Y, L, W1, W2, D)
    out = jnp.transpose(out, (0, 3, 1, 2, 4, 5, 6))
    return out


def init_params(key, dim, num_types, num_bias_entries, heads):
    ks = jax.random.split(key, 8)
    std = 0.02
    return {
        "q_w": jax.random.normal(ks[0], (num_types, dim, dim), jnp.float32) * std,
        "q_b": jax.random.normal(ks[1], (num_types, dim), jnp.float32) * std,
        "k_w": jax.random.normal(ks[2], (num_types, dim, dim), jnp.float32) * std,
        "k_b": jax.random.normal(ks[3], (num_types, dim), jnp.float32) * std,
        "v_w": jax.random.normal(ks[4], (num_types, dim, dim), jnp.float32) * std,
        "v_b": jax.random.normal(ks[5], (num_types, dim), jnp.float32) * std,
        "out_w": jax.random.normal(ks[6], (dim, dim), jnp.float32) * std,
        "rel_pos_table": jax.random.normal(
            ks[7], (num_bias_entries, heads), jnp.float32) * std,
    }


if __name__ == "__main__":
    # Small shapes consistent with the module's forward signature.
    dim = 32
    dim_head = 16
    heads = dim // dim_head
    agent_size = 2          # L  (== window_size[0] of the position-bias table)
    window = 4              # W1 == W2
    num_types = 2
    B, X, Y = 2, 2, 2       # batch, height (windows), width (windows)

    key = jax.random.PRNGKey(0)
    kx, kp = jax.random.split(key)
    x = jax.random.normal(
        kx, (B, agent_size, X, Y, window, window, dim), jnp.float32)

    n_bias = (2 * agent_size - 1) * (2 * window - 1) * (2 * window - 1)
    params = init_params(kp, dim, num_types, n_bias, heads)

    out = hgt_attention_forward(x, params, dim_head=dim_head, type_id=1)
    jax.block_until_ready(out)
    assert out.shape == x.shape, (out.shape, x.shape)
    assert bool(jnp.all(jnp.isfinite(out)))
    print("KERNEL_OK")
</pallas_src>

<mosaic_0001>
module attributes {stable_mosaic.version = 11 : i64} {
  func.func @hgt_attention_kernel(%arg0: i32, %arg1: memref<4x32x32xbf16, #tpu.memory_space<vmem>>, %arg2: memref<2x32x96xbf16, #tpu.memory_space<vmem>>, %arg3: memref<2x96xf32, #tpu.memory_space<vmem>>, %arg4: memref<2x32x32xbf16, #tpu.memory_space<vmem>>, %arg5: memref<2x16x32xbf16, #tpu.memory_space<vmem>>, %arg6: memref<4x32x32xf32, #tpu.memory_space<vmem>>, %arg7: memref<4x32x96xbf16, #tpu.memory_space<vmem>>) attributes {dimension_semantics = [#tpu.dimension_semantics<parallel>], iteration_bounds = array<i64: 2>, scalar_prefetch = 0 : i64, scratch_operands = 1 : i64, tpu.core_type = #tpu.core_type<tc>, window_params = [{transform_indices = @transform_0, window_bounds = array<i64: 4, 32, 32>}, {pipeline_mode = #tpu.pipeline_mode<synchronous>, transform_indices = @transform_1, window_bounds = array<i64: 2, 32, 96>}, {pipeline_mode = #tpu.pipeline_mode<synchronous>, transform_indices = @transform_2, window_bounds = array<i64: 2, 96>}, {pipeline_mode = #tpu.pipeline_mode<synchronous>, transform_indices = @transform_3, window_bounds = array<i64: 2, 32, 32>}, {pipeline_mode = #tpu.pipeline_mode<synchronous>, transform_indices = @transform_4, window_bounds = array<i64: 2, 16, 32>}, {transform_indices = @transform_5, window_bounds = array<i64: 4, 32, 32>}]} {
    %c0 = arith.constant 0 : index
    %c0_0 = arith.constant 0 : index
    %c0_1 = arith.constant 0 : index
    %0 = vector.load %arg1[%c0, %c0_0, %c0_1] : memref<4x32x32xbf16, #tpu.memory_space<vmem>>, vector<4x16x32xbf16>
    %c0_2 = arith.constant 0 : index
    %c0_3 = arith.constant 0 : index
    %c0_4 = arith.constant 0 : index
    %1 = vector.load %arg2[%c0_2, %c0_3, %c0_4] : memref<2x32x96xbf16, #tpu.memory_space<vmem>>, vector<1x32x96xbf16>
    %2 = vector.shape_cast %1 : vector<1x32x96xbf16> to vector<32x96xbf16>
    %cst = arith.constant dense<0.000000e+00> : vector<4x16x96xf32>
    %3 = tpu.matmul %0, %2, %cst {dimension_numbers = #tpu.dot_dimension_numbers<[2], [0], [0, 1], [1], [0, 0, 0, 1, 1, 1], [], []>} : vector<4x16x32xbf16>, vector<32x96xbf16>, vector<4x16x96xf32> -> vector<4x16x96xf32>
    %c0_5 = arith.constant 0 : index
    %c0_6 = arith.constant 0 : index
    %4 = vector.load %arg3[%c0_5, %c0_6] : memref<2x96xf32, #tpu.memory_space<vmem>>, vector<1x96xf32>
    %5 = vector.shape_cast %4 : vector<1x96xf32> to vector<96xf32>
    %6 = vector.shape_cast %5 : vector<96xf32> to vector<1x1x96xf32>
    %7 = vector.broadcast %6 : vector<1x1x96xf32> to vector<4x16x96xf32>
    %8 = arith.addf %3, %7 : vector<4x16x96xf32>
    %9 = arith.truncf %8 : vector<4x16x96xf32> to vector<4x16x96xbf16>
    %c0_7 = arith.constant 0 : index
    %c0_8 = arith.constant 0 : index
    %c0_9 = arith.constant 0 : index
    %10 = vector.load %arg7[%c0_7, %c0_8, %c0_9] : memref<4x32x96xbf16, #tpu.memory_space<vmem>>, vector<4x16x96xbf16>
    tpu.vector_store %arg7[%c0_7, %c0_8, %c0_9], %9 {strides = array<i32>} : memref<4x32x96xbf16, #tpu.memory_space<vmem>>, vector<4x16x96xbf16>,
    %c0_10 = arith.constant 0 : index
    %c16 = arith.constant 16 : index
    %c0_11 = arith.constant 0 : index
    %11 = vector.load %arg1[%c0_10, %c16, %c0_11] : memref<4x32x32xbf16, #tpu.memory_space<vmem>>, vector<4x16x32xbf16>
    %c1 = arith.constant 1 : index
    %c0_12 = arith.constant 0 : index
    %c0_13 = arith.constant 0 : index
    %12 = vector.load %arg2[%c1, %c0_12, %c0_13] : memref<2x32x96xbf16, #tpu.memory_space<vmem>>, vector<1x32x96xbf16>
    %13 = vector.shape_cast %12 : vector<1x32x96xbf16> to vector<32x96xbf16>
    %cst_14 = arith.constant dense<0.000000e+00> : vector<4x16x96xf32>
    %14 = tpu.matmul %11, %13, %cst_14 {dimension_numbers = #tpu.dot_dimension_numbers<[2], [0], [0, 1], [1], [0, 0, 0, 1, 1, 1], [], []>} : vector<4x16x32xbf16>, vector<32x96xbf16>, vector<4x16x96xf32> -> vector<4x16x96xf32>
    %c1_15 = arith.constant 1 : index
    %c0_16 = arith.constant 0 : index
    %15 = vector.load %arg3[%c1_15, %c0_16] : memref<2x96xf32, #tpu.memory_space<vmem>>, vector<1x96xf32>
    %16 = vector.shape_cast %15 : vector<1x96xf32> to vector<96xf32>
    %17 = vector.shape_cast %16 : vector<96xf32> to vector<1x1x96xf32>
    %18 = vector.broadcast %17 : vector<1x1x96xf32> to vector<4x16x96xf32>
    %19 = arith.addf %14, %18 : vector<4x16x96xf32>
    %20 = arith.truncf %19 : vector<4x16x96xf32> to vector<4x16x96xbf16>
    %c0_17 = arith.constant 0 : index
    %c16_18 = arith.constant 16 : index
    %c0_19 = arith.constant 0 : index
    %21 = vector.load %arg7[%c0_17, %c16_18, %c0_19] : memref<4x32x96xbf16, #tpu.memory_space<vmem>>, vector<4x16x96xbf16>
    tpu.vector_store %arg7[%c0_17, %c16_18, %c0_19], %20 {strides = array<i32>} : memref<4x32x96xbf16, #tpu.memory_space<vmem>>, vector<4x16x96xbf16>,
    %cst_20 = arith.constant 0.000000e+00 : f32
    %22 = vector.broadcast %cst_20 : f32 to vector<128x32xf32>
    %c0_21 = arith.constant 0 : index
    %c0_22 = arith.constant 0 : index
    %c0_23 = arith.constant 0 : index
    %23 = vector.load %arg7[%c0_21, %c0_22, %c0_23] : memref<4x32x96xbf16, #tpu.memory_space<vmem>>, vector<4x32x16xbf16>
    %c0_24 = arith.constant 0 : index
    %c0_25 = arith.constant 0 : index
    %c32 = arith.constant 32 : index
    %24 = vector.load %arg7[%c0_24, %c0_25, %c32] : memref<4x32x96xbf16, #tpu.memory_space<vmem>>, vector<4x32x16xbf16>
    %c0_26 = arith.constant 0 : index
    %c0_27 = arith.constant 0 : index
    %c64 = arith.constant 64 : index
    %25 = vector.load %arg7[%c0_26, %c0_27, %c64] : memref<4x32x96xbf16, #tpu.memory_space<vmem>>, vector<4x32x16xbf16>
    %cst_28 = arith.constant dense<0.000000e+00> : vector<4x32x32xf32>
    %26 = tpu.matmul %23, %24, %cst_28 {dimension_numbers = #tpu.dot_dimension_numbers<[2], [2], [1], [1], [0, 0, 0, 1, 1, 1], [0], [0]>} : vector<4x32x16xbf16>, vector<4x32x16xbf16>, vector<4x32x32xf32> -> vector<4x32x32xf32>
    %c0_29 = arith.constant 0 : index
    %c0_30 = arith.constant 0 : index
    %c0_31 = arith.constant 0 : index
    %27 = vector.load %arg4[%c0_29, %c0_30, %c0_31] : memref<2x32x32xbf16, #tpu.memory_space<vmem>>, vector<1x32x32xbf16>
    %28 = vector.shape_cast %27 : vector<1x32x32xbf16> to vector<32x32xbf16>
    %29 = arith.extf %28 : vector<32x32xbf16> to vector<32x32xf32>
    %30 = vector.shape_cast %29 : vector<32x32xf32> to vector<1x32x32xf32>
    %31 = vector.broadcast %30 : vector<1x32x32xf32> to vector<4x32x32xf32>
    %32 = arith.addf %26, %31 : vector<4x32x32xf32>
    %cst_32 = arith.constant dense<0xFF800000> : vector<4x32xf32>
    %33 = vector.multi_reduction <maximumf>, %32, %cst_32 [2] : vector<4x32x32xf32> to vector<4x32xf32>
    %34 = vector.shape_cast %33 : vector<4x32xf32> to vector<4x32x1xf32>
    %35 = vector.broadcast %34 : vector<4x32x1xf32> to vector<4x32x32xf32>
    %36 = arith.subf %32, %35 : vector<4x32x32xf32>
    %37 = math.exp %36 : vector<4x32x32xf32>
    %cst_33 = arith.constant dense<0.000000e+00> : vector<4x32xf32>
    %38 = vector.multi_reduction <add>, %37, %cst_33 [2] : vector<4x32x32xf32> to vector<4x32xf32>
    %39 = vector.shape_cast %38 : vector<4x32xf32> to vector<4x32x1xf32>
    %40 = tpu.reciprocal %39 {approx = true} : vector<4x32x1xf32> -> vector<4x32x1xf32>
    %41 = vector.broadcast %40 : vector<4x32x1xf32> to vector<4x32x32xf32>
    %42 = arith.mulf %37, %41 : vector<4x32x32xf32>
    %43 = arith.truncf %42 : vector<4x32x32xf32> to vector<4x32x32xbf16>
    %cst_34 = arith.constant dense<0.000000e+00> : vector<4x32x16xf32>
    %44 = tpu.matmul %43, %25, %cst_34 {dimension_numbers = #tpu.dot_dimension_numbers<[2], [1], [1], [2], [0, 0, 0, 1, 1, 2], [0], [0]>} : vector<4x32x32xbf16>, vector<4x32x16xbf16>, vector<4x32x16xf32> -> vector<4x32x16xf32>
    %45 = vector.shape_cast %44 : vector<4x32x16xf32> to vector<128x16xf32>
    %46 = arith.truncf %45 : vector<128x16xf32> to vector<128x16xbf16>
    %c0_35 = arith.constant 0 : index
    %c0_36 = arith.constant 0 : index
    %c0_37 = arith.constant 0 : index
    %47 = vector.load %arg5[%c0_35, %c0_36, %c0_37] : memref<2x16x32xbf16, #tpu.memory_space<vmem>>, vector<1x16x32xbf16>
    %48 = vector.shape_cast %47 : vector<1x16x32xbf16> to vector<16x32xbf16>
    %cst_38 = arith.constant dense<0.000000e+00> : vector<128x32xf32>
    %49 = tpu.matmul %46, %48, %cst_38 {dimension_numbers = #tpu.dot_dimension_numbers<[1], [0], [0], [1], [0, 0, 1, 1], [], []>} : vector<128x16xbf16>, vector<16x32xbf16>, vector<128x32xf32> -> vector<128x32xf32>
    %50 = arith.addf %22, %49 : vector<128x32xf32>
    %c0_39 = arith.constant 0 : index
    %c0_40 = arith.constant 0 : index
    %c16_41 = arith.constant 16 : index
    %51 = vector.load %arg7[%c0_39, %c0_40, %c16_41] : memref<4x32x96xbf16, #tpu.memory_space<vmem>>, vector<4x32x16xbf16>
    %c0_42 = arith.constant 0 : index
    %c0_43 = arith.constant 0 : index
    %c48 = arith.constant 48 : index
    %52 = vector.load %arg7[%c0_42, %c0_43, %c48] : memref<4x32x96xbf16, #tpu.memory_space<vmem>>, vector<4x32x16xbf16>
    %c0_44 = arith.constant 0 : index
    %c0_45 = arith.constant 0 : index
    %c80 = arith.constant 80 : index
    %53 = vector.load %arg7[%c0_44, %c0_45, %c80] : memref<4x32x96xbf16, #tpu.memory_space<vmem>>, vector<4x32x16xbf16>
    %cst_46 = arith.constant dense<0.000000e+00> : vector<4x32x32xf32>
    %54 = tpu.matmul %51, %52, %cst_46 {dimension_numbers = #tpu.dot_dimension_numbers<[2], [2], [1], [1], [0, 0, 0, 1, 1, 1], [0], [0]>} : vector<4x32x16xbf16>, vector<4x32x16xbf16>, vector<4x32x32xf32> -> vector<4x32x32xf32>
    %c1_47 = arith.constant 1 : index
    %c0_48 = arith.constant 0 : index
    %c0_49 = arith.constant 0 : index
    %55 = vector.load %arg4[%c1_47, %c0_48, %c0_49] : memref<2x32x32xbf16, #tpu.memory_space<vmem>>, vector<1x32x32xbf16>
    %56 = vector.shape_cast %55 : vector<1x32x32xbf16> to vector<32x32xbf16>
    %57 = arith.extf %56 : vector<32x32xbf16> to vector<32x32xf32>
    %58 = vector.shape_cast %57 : vector<32x32xf32> to vector<1x32x32xf32>
    %59 = vector.broadcast %58 : vector<1x32x32xf32> to vector<4x32x32xf32>
    %60 = arith.addf %54, %59 : vector<4x32x32xf32>
    %cst_50 = arith.constant dense<0xFF800000> : vector<4x32xf32>
    %61 = vector.multi_reduction <maximumf>, %60, %cst_50 [2] : vector<4x32x32xf32> to vector<4x32xf32>
    %62 = vector.shape_cast %61 : vector<4x32xf32> to vector<4x32x1xf32>
    %63 = vector.broadcast %62 : vector<4x32x1xf32> to vector<4x32x32xf32>
    %64 = arith.subf %60, %63 : vector<4x32x32xf32>
    %65 = math.exp %64 : vector<4x32x32xf32>
    %cst_51 = arith.constant dense<0.000000e+00> : vector<4x32xf32>
    %66 = vector.multi_reduction <add>, %65, %cst_51 [2] : vector<4x32x32xf32> to vector<4x32xf32>
    %67 = vector.shape_cast %66 : vector<4x32xf32> to vector<4x32x1xf32>
    %68 = tpu.reciprocal %67 {approx = true} : vector<4x32x1xf32> -> vector<4x32x1xf32>
    %69 = vector.broadcast %68 : vector<4x32x1xf32> to vector<4x32x32xf32>
    %70 = arith.mulf %65, %69 : vector<4x32x32xf32>
    %71 = arith.truncf %70 : vector<4x32x32xf32> to vector<4x32x32xbf16>
    %cst_52 = arith.constant dense<0.000000e+00> : vector<4x32x16xf32>
    %72 = tpu.matmul %71, %53, %cst_52 {dimension_numbers = #tpu.dot_dimension_numbers<[2], [1], [1], [2], [0, 0, 0, 1, 1, 2], [0], [0]>} : vector<4x32x32xbf16>, vector<4x32x16xbf16>, vector<4x32x16xf32> -> vector<4x32x16xf32>
    %73 = vector.shape_cast %72 : vector<4x32x16xf32> to vector<128x16xf32>
    %74 = arith.truncf %73 : vector<128x16xf32> to vector<128x16xbf16>
    %c1_53 = arith.constant 1 : index
    %c0_54 = arith.constant 0 : index
    %c0_55 = arith.constant 0 : index
    %75 = vector.load %arg5[%c1_53, %c0_54, %c0_55] : memref<2x16x32xbf16, #tpu.memory_space<vmem>>, vector<1x16x32xbf16>
    %76 = vector.shape_cast %75 : vector<1x16x32xbf16> to vector<16x32xbf16>
    %cst_56 = arith.constant dense<0.000000e+00> : vector<128x32xf32>
    %77 = tpu.matmul %74, %76, %cst_56 {dimension_numbers = #tpu.dot_dimension_numbers<[1], [0], [0], [1], [0, 0, 1, 1], [], []>} : vector<128x16xbf16>, vector<16x32xbf16>, vector<128x32xf32> -> vector<128x32xf32>
    %78 = arith.addf %50, %77 : vector<128x32xf32>
    %79 = vector.shape_cast %78 : vector<128x32xf32> to vector<4x32x32xf32>
    %c0_57 = arith.constant 0 : index
    %c0_58 = arith.constant 0 : index
    %c0_59 = arith.constant 0 : index
    %80 = vector.load %arg6[%c0_57, %c0_58, %c0_59] : memref<4x32x32xf32, #tpu.memory_space<vmem>>, vector<4x32x32xf32>
    tpu.vector_store %arg6[%c0_57, %c0_58, %c0_59], %79 {strides = array<i32>} : memref<4x32x32xf32, #tpu.memory_space<vmem>>, vector<4x32x32xf32>,
    return
  }
  func.func @transform_0(%arg0: i32) -> (i32, i32, i32) {
    %c0_i32 = arith.constant 0 : i32
    %c0_i32_0 = arith.constant 0 : i32
    %c0_i32_1 = arith.constant 0 : i32
    return %arg0, %c0_i32, %c0_i32_0 : i32, i32, i32
  }
  func.func @transform_1(%arg0: i32) -> (i32, i32, i32) {
    %c0_i32 = arith.constant 0 : i32
    %c0_i32_0 = arith.constant 0 : i32
    %c0_i32_1 = arith.constant 0 : i32
    %c0_i32_2 = arith.constant 0 : i32
    return %c0_i32, %c0_i32_0, %c0_i32_1 : i32, i32, i32
  }
  func.func @transform_2(%arg0: i32) -> (i32, i32) {
    %c0_i32 = arith.constant 0 : i32
    %c0_i32_0 = arith.constant 0 : i32
    %c0_i32_1 = arith.constant 0 : i32
    return %c0_i32, %c0_i32_0 : i32, i32
  }
  func.func @transform_3(%arg0: i32) -> (i32, i32, i32) {
    %c0_i32 = arith.constant 0 : i32
    %c0_i32_0 = arith.constant 0 : i32
    %c0_i32_1 = arith.constant 0 : i32
    %c0_i32_2 = arith.constant 0 : i32
    return %c0_i32, %c0_i32_0, %c0_i32_1 : i32, i32, i32
  }
  func.func @transform_4(%arg0: i32) -> (i32, i32, i32) {
    %c0_i32 = arith.constant 0 : i32
    %c0_i32_0 = arith.constant 0 : i32
    %c0_i32_1 = arith.constant 0 : i32
    %c0_i32_2 = arith.constant 0 : i32
    return %c0_i32, %c0_i32_0, %c0_i32_1 : i32, i32, i32
  }
  func.func @transform_5(%arg0: i32) -> (i32, i32, i32) {
    %c0_i32 = arith.constant 0 : i32
    %c0_i32_0 = arith.constant 0 : i32
    %c0_i32_1 = arith.constant 0 : i32
    return %arg0, %c0_i32, %c0_i32_0 : i32, i32, i32
  }
}

</mosaic_0001>

<bundles_post_ra>
// kernel: tpu_custom_call.1
= control target key start
LH: loop header
LB: loop body
LE: loop exit
PB: predicated region body
PF: predicated region fallthrough
CT: control target
= control target key end

     0   :  { %10 = vsyncpa [#allocation4], 0  ;;  %s4202_s0 = inlined_call_operand.hbm [shape: bf16[8,32,32], index: 0, kind: input, shape index: {}]   ;;  %s4203_s1 = inlined_call_operand.hbm [shape: bf16[2,32,96], index: 1, kind: input, shape index: {}]   ;;  %s4204_s2 = inlined_call_operand.vmem [shape: f32[2,96], index: 2, kind: input, shape index: {}]   ;;  %s4205_s3 = inlined_call_operand.hbm [shape: bf16[2,32,32], index: 3, kind: input, shape index: {}]   ;;  %s4206_s4 = inlined_call_operand.hbm [shape: bf16[2,16,32], index: 4, kind: input, shape index: {}]   ;;  %s4207_s5 = inlined_call_operand.hbm [shape: f32[8,32,32], index: 5, kind: output, shape index: {}]  }
   0x1   :  { %12 = vsyncpa [#allocation4 + $0x1], 0 }
   0x2   :  { %13 = vsyncpa [#allocation7], 0 }
   0x3   :  { %14 = vsyncpa [#allocation10], 0 }
   0x4   :  { %15 = vsyncpa [#allocation5], 0 }
   0x5   :  { %17 = vsyncpa [#allocation5 + $0x1], 0  ;;  %s3295_s18 = smov 0   ;;  %s3297_s19 = smov 0  }
   0x6   :  { %s3299_s20 = smov 0   ;;  %s3301_s21 = smov 0  }
   0x7 LB: > { %s3316_s22 = sadd.s32 4294967295, %s3249_s21   ;;  %s2396_s23 = sadd.s32 4294967294, %s3249_s21   ;;  %s3249_s21 = sphi %s3301_s21, %s4230_s21   ;;  %s3245_s20 = sphi %s3299_s20, %s4229_s20   ;;  %s3241_s19 = sphi %s3297_s19, %s4228_s19   ;;  %s3237_s18 = sphi %s3295_s18, %s4227_s18  }
   0x8   : > { %p43_p0 = scmp.ne.s32.totalorder %s3241_s19, %s3237_s18  ;;  %p4208_p1 = scmp.eq.s32.totalorder %s3316_s22, 0 }
   0x9   : > { %p157_p3 = scmp.eq.s32.totalorder %s2396_s23, 1  ;;  %p2397_p5 = scmp.ge.s32.totalorder %s3249_s21, 1 }
   0xa   : > { %p3325_p4 = por %p4208_p1, %p43_p0  ;;  %p164_p7 = scmp.lt.s32.totalorder %s3249_s21, 3 }
   0xb   : > { %p3330_p6 = por %p157_p3, %p43_p0  ;;  %s3251_s27 = smov [#allocation6]  }
   0xc   : > { %s4211_s24 = scalar_select %p3325_p4, 1, 0 }
   0xd   : > { %s4212_s25 = scalar_select %p3330_p6, 1, 0 }
   0xe   : > { %p3335_p8 = pnand %p2397_p5, %p164_p7  ;;  %s176_s28 = sshll.u32 %s3251_s27, 4  ;;  %s3339_s28 = int_to_ptr.vmem [resolvable:$true] %s176_s28 }
   0xf   : > { %s3252_s30 = smov [#allocation8]   ;;  %s3253_s7 = smov [#allocation9]  }
  0x10   : > { %s4213_s26 = scalar_select %p3335_p8, 1, 0 }
  0x11   : > { %p2842_p9 = pneg %p3335_p8  ;;  %s192_s6 = sshll.u32 %s3252_s30, 4  ;;  %s3350_s6 = int_to_ptr.vmem [resolvable:$true] %s192_s6 }
  0x12   : > { %s3352_s8 = sshll.u32 %s3253_s7, 4  ;;  %s3061_s11 = scalar_lea.hbm %s4203_s1, 512  ;;  %s206_s8 = int_to_ptr.vmem [resolvable:$true] %s3352_s8 }
  0x13   : > { %p3346_p11 = pnand %p2842_p9, %p4208_p1  ;;  %p3062_p12 = scmp.ne.s32.totalorder %s4203_s1, %s3061_s11 }
  0x14   : > { %p3068_p5 = scmp.lt.u32.totalorder %s3061_s11, %s4203_s1 }
  0x15   : > { %p3362_p13 = pneg %p3346_p11 }
  0x17   : > { %p3064_p0 = pnand %p3362_p13, %p3062_p12 }
  0x19   : > { %p3065_p3 = pneg %p3064_p0 }
  0x1b   : > { %p3070_p7 = pnand %p3068_p5, %p3065_p3 }
  0x1d   : > { %3073 = shalt.err (!%p3070_p7)
}
  0x1e   : > { %s3074_s17 = scalar_lea.vmem %s3339_s28, 512  ;;  %p3082_p2 = scmp.lt.s32.totalorder %s3339_s28, %s3339_s28 }
  0x1f   : > { %p3075_p9 = scmp.ne.s32.totalorder %s3339_s28, %s3074_s17  ;;  %p3083_p6 = scmp.lt.s32.totalorder %s3074_s17, %s3074_s17 }
  0x21   : > { %p3077_p10 = pnand %p3075_p9, %p3362_p13  ;;  %p3084_p12 = por %p3083_p6, %p3082_p2 }
  0x23   : > { %p3078_p1 = pneg %p3077_p10 }
  0x25   : > { %p3085_p0 = pnand %p3084_p12, %p3078_p1 }
  0x27   : > { %3088 = shalt.err (!%p3085_p0)
}
  0x28   : > { %s3254_s23 = smov 64   ;;  %s3255_s27 = smov 4  }
  0x29   : > { %2845 = dma.hbm_to_vmem [thread:$0]  (!%p3346_p11), %s4203_s1, 512, %s3339_s28, [#allocation7], %s3254_s23, %s3254_s23, %s3255_s27  }
  0x2a   : > { %s3089_s11 = scalar_lea.hbm %s4205_s3, 512 }
  0x2b   : > { %p3090_p1 = scmp.ne.s32.totalorder %s4205_s3, %s3089_s11  ;;  %p3096_p10 = scmp.lt.u32.totalorder %s3089_s11, %s4205_s3 }
  0x2d   : > { %p3092_p2 = pnand %p3090_p1, %p3362_p13 }
  0x2f   : > { %p3093_p6 = pneg %p3092_p2 }
  0x31   : > { %p3098_p3 = pnand %p3096_p10, %p3093_p6 }
  0x33   : > { %3101 = shalt.err (!%p3098_p3)
}
  0x34   : > { %s3102_s28 = scalar_lea.vmem %s3350_s6, 512  ;;  %p3110_p12 = scmp.lt.s32.totalorder %s3350_s6, %s3350_s6 }
  0x35   : > { %p3103_p5 = scmp.ne.s32.totalorder %s3350_s6, %s3102_s28  ;;  %p3111_p0 = scmp.lt.s32.totalorder %s3102_s28, %s3102_s28 }
  0x37   : > { %p3105_p7 = pnand %p3103_p5, %p3362_p13  ;;  %p3112_p1 = por %p3111_p0, %p3110_p12 }
  0x39   : > { %p3106_p9 = pneg %p3105_p7 }
  0x3b   : > { %p3113_p2 = pnand %p3112_p1, %p3106_p9 }
  0x3d   : > { %3116 = shalt.err (!%p3113_p2)
}
  0x3e   : > { %2848 = dma.hbm_to_vmem [thread:$0]  (!%p3346_p11), %s4205_s3, 512, %s3350_s6, [#allocation7], %s3254_s23, %s3254_s23, %s3255_s27  }
  0x3f   : > { %s3117_s10 = scalar_lea.hbm %s4206_s4, 256 }
  0x40   : > { %p3118_p6 = scmp.ne.s32.totalorder %s4206_s4, %s3117_s10  ;;  %p3124_p5 = scmp.lt.u32.totalorder %s3117_s10, %s4206_s4 }
  0x42   : > { %p3120_p10 = pnand %p3118_p6, %p3362_p13 }
  0x44   : > { %p3121_p3 = pneg %p3120_p10 }
  0x46   : > { %p3126_p7 = pnand %p3124_p5, %p3121_p3 }
  0x48   : > { %3129 = shalt.err (!%p3126_p7)
}
  0x49   : > { %s3130_s16 = scalar_lea.vmem %s206_s8, 256  ;;  %p3138_p1 = scmp.lt.s32.totalorder %s206_s8, %s206_s8 }
  0x4a   : > { %p3131_p9 = scmp.ne.s32.totalorder %s206_s8, %s3130_s16  ;;  %p3139_p2 = scmp.lt.s32.totalorder %s3130_s16, %s3130_s16 }
  0x4c   : > { %p3133_p12 = pnand %p3131_p9, %p3362_p13  ;;  %p3140_p4 = por %p3139_p2, %p3138_p1 }
  0x4e   : > { %p3134_p0 = pneg %p3133_p12 }
  0x50   : > { %p3141_p8 = pnand %p3140_p4, %p3134_p0 }
  0x52   : > { %3144 = shalt.err (!%p3141_p8)
}
  0x53   : > { %2851 = dma.hbm_to_vmem [thread:$0]  (!%p3346_p11), %s4206_s4, 256, %s206_s8, [#allocation10], %s3254_s23, %s3254_s23, %s3255_s27  }
  0x54   : > { %s3435_s14 = sadd.s32 1, %s3249_s21   ;;  %s30_s17 = sadd.s32 1, %s3245_s20 }
  0x55   : > { %s27_s29 = ssub.s32 %s3249_s21, %s3435_s14  ;;  %p37_p8 = scmp.ne.s32.totalorder %s3245_s20, %s3241_s19 }
  0x56   : > { %p28_p4 = scmp.eq.s32.totalorder %s27_s29, 0  ;;  %p38_p13 = scmp.eq.s32.totalorder %s3249_s21, 0 }
  0x57   : > { %p2863_p6 = scmp.lt.s32.totalorder %s3249_s21, 2  ;;  %p4216_p3 = scmp.eq.s32.totalorder %s3316_s22, 1 }
  0x58   : > { %s3445_s30 = scalar_select %p28_p4, %s3245_s20, %s30_s17  }
  0x59   : > { %p39_p10 = por %p38_p13, %p37_p8  ;;  %p3449_p5 = por %p4216_p3, %p37_p8 }
  0x5a   : > { %s219_s9 = sand.u32 1, %s3245_s20   ;;  %s2491_s10 = sshll.u32 %s3249_s21, 10 }
  0x5b   : > { %s2402_s8 = sshll.u32 %s219_s9, 6  ;;  %s3458_s13 = scalar_lea.hbm %s4202_s0, %s2491_s10 }
  0x5c   : > { %s223_s15 = scalar_lea.vmem [#allocation3], %s2402_s8  ;;  %p3460_p11 = pnand %p2863_p6, %p39_p10 }
  0x5d   : > { %s231_s16 = sshll.u32 %s223_s15, 4  ;;  %s3466_s28 = scalar_lea.sflag [#allocation4], %s219_s9  ;;  %s3464_s16 = int_to_ptr.vmem [resolvable:$true] %s231_s16 }
  0x5e   : > { %s3145_s29 = scalar_lea.hbm %s3458_s13, 1024  ;;  %p3147_p9 = pneg %p3460_p11 }
  0x5f   : > { %p3146_p7 = scmp.ne.s32.totalorder %s3458_s13, %s3145_s29  ;;  %s3150_s8 = scalar_lea.hbm %s4202_s0, 2048 }
  0x60   : > { %p3151_p1 = scmp.lt.u32.totalorder %s3458_s13, %s4202_s0  ;;  %p3152_p2 = scmp.lt.u32.totalorder %s3150_s8, %s3145_s29 }
  0x61   : > { %p3148_p12 = pnand %p3147_p9, %p3146_p7  ;;  %p3154_p8 = scmp.lt.u32.totalorder %s3145_s29, %s3458_s13 }
  0x62   : > { %p3153_p4 = por %p3152_p2, %p3151_p1 }
  0x63   : > { %p3149_p0 = pneg %p3148_p12 }
  0x64   : > { %p3155_p13 = por %p3154_p8, %p3153_p4 }
  0x66   : > { %p3156_p6 = pnand %p3155_p13, %p3149_p0 }
  0x68   : > { %3159 = shalt.err (!%p3156_p6)
}
  0x69   : > { %s3160_s9 = scalar_lea.vmem %s3464_s16, 1024  ;;  %s3256_s15 = smov [#allocation3]  }
  0x6a   : > { %p3161_p10 = scmp.ne.s32.totalorder %s3464_s16, %s3160_s9  ;;  %s3165_s17 = sshll.u32 %s3256_s15, 4  ;;  %s3166_s17 = int_to_ptr.vmem [resolvable:$false] %s3165_s17 }
  0x6b   : > { %s3167_s10 = scalar_lea.vmem %s3166_s17, 2048  ;;  %p3168_p12 = scmp.lt.s32.totalorder %s3464_s16, %s3166_s17 }
  0x6c   : > { %p3163_p3 = pnand %p3161_p10, %p3147_p9  ;;  %p3169_p1 = scmp.lt.s32.totalorder %s3167_s10, %s3160_s9 }
  0x6e   : > { %p3164_p7 = pneg %p3163_p3  ;;  %p3170_p2 = por %p3169_p1, %p3168_p12 }
  0x70   : > { %p3171_p4 = pnand %p3170_p2, %p3164_p7 }
  0x72   : > { %3174 = shalt.err (!%p3171_p4)
}
  0x73   : > { %2855 = dma.hbm_to_vmem [thread:$0]  (!%p3460_p11), %s3458_s13, 1024, %s3464_s16, %s3466_s28, %s3254_s23, %s3254_s23, %s3255_s27  }
  0x74   : > { %p4219_p9 = scmp.ne.s32.totalorder %s4213_s26, 0 }
  0x75   : > { %s3500_s29 = sand.u32 (!%p4219_p9), 1, %s3241_s19   ;;  %p4220_p0 = scmp.ne.s32.totalorder (!%p4219_p9), %s4211_s24, 0 }
  0x76   : > { %243 = sbr.rel (%p4219_p9) target bundleno = 2133 (0x855), region = 40  ;;  %s2407_s8 = sshll.u32 (!%p4219_p9), %s3500_s29, 6 }
  0x77   : > { %s246_s11 = scalar_lea.sflag (!%p4219_p9), [#allocation4], %s3500_s29  ;;  %s3504_s12 = scalar_lea.vmem (!%p4219_p9), [#allocation3], %s2407_s8 }
  0x7d   : > { %3220 = dma.done.wait (%p4220_p0), %s246_s11, 1024  }
  0x7e   : > { %3222 = vsyncadd (%p4220_p0), %s246_s11, 4294966272  ;;  %p4221_p11 = scmp.eq.s32.totalorder %s3316_s22, 0 }
  0x80   : > { %3224 = dma.done.wait (%p4221_p11), [#allocation7], 1024   ;;  %p4222_p8 = pmov %p4221_p11 }
  0x82   : > { %3226 = vsyncadd (%p4222_p8), [#allocation7], 4294966272  ;;  %p4223_p13 = pmov %p4222_p8 }
  0x83   : > { %p4224_p6 = pmov %p4222_p8 }
  0x84   : > { %3228 = dma.done.wait (%p4223_p13), [#allocation10], 256  }
  0x85   : > { %3230 = vsyncadd (%p4224_p6), [#allocation10], 4294967040  ;;  %v2912_v0 = vld [vmem:[#allocation6] sm:$0xff]   ;;  %v2913_v1 = vld [vmem:[#allocation6 + $0x10] sm:$0xff]   ;;  %vm340_vm0 = vcmask 261120   ;;  %vm422_vm1 = vcmask 785408  }
  0x86   : > { %2606 = vmatprep.subr.bf16.mxu0 %v2912_v0  ;;  %v2914_v2 = vld [vmem:[#allocation6 + $0x8] sm:$0xff]   ;;  %2618 = vmatprep.subr.bf16.mxu1 %v2913_v1  ;;  %v2915_v3 = vld [vmem:[#allocation6 + $0x18] sm:$0xff]   ;;  %v2916_v4 = vld [vmem:[%s3504_s12] sm:$0xff]   ;;  %vm584_vm2 = vcmask 130048   ;;  %s3257_s13 = smov 96   ;;  %s3258_s16 = smov 64  }
  0x87   : > { %2607 = vmatpush3.bf16.msra.mxu0 %v2912_v0  ;;  %2619 = vmatpush3.bf16.msra.mxu1 %v2913_v1  ;;  %v2917_v5 = vld [vmem:[%s3504_s12 + $0x8] sm:$0xff]   ;;  %v2918_v6 = vld [vmem:[%s3504_s12 + $0x10] sm:$0xff]   ;;  %v2919_v7 = vld [vmem:[%s3504_s12 + $0x18] sm:$0xff]   ;;  %s3259_s6 = smov 80   ;;  %s3260_s28 = smov 112  }
  0x88   : > { %2608 = vmatprep.subr.bf16.mxu0 %v2914_v2  ;;  %2620 = vmatprep.subr.bf16.mxu1 %v2915_v3  ;;  %v2920_v8 = vld [vmem:[%s3504_s12 + $0x28] sm:$0xff]   ;;  %v2922_v9 = vld [vmem:[%s3504_s12 + $0x20] sm:$0xff]   ;;  %v2923_v10 = vld [vmem:[%s3504_s12 + $0x30] sm:$0xff]   ;;  %s3261_s9 = smov 48   ;;  %s2411_s15 = sshll.u32 %s3500_s29, 7 }
  0x89   : > { %2610 = vmatprep.mubr.msk.bf16.mxu0 %vm340_vm0, %v2916_v4  ;;  %2622 = vmatprep.mubr.msk.bf16.mxu1 %vm340_vm0, %v2917_v5  ;;  %v2921_v11 = vld [vmem:[%s3504_s12 + $0x38] sm:$0xff]   ;;  %v2423_v12 = vld [vmem:[%s4204_s2 + $0x1] ss:$0 sm:$0xff]  ;;  %v2412_v14 = vld [vmem:[%s4204_s2] ss:$0 sm:$0xff]  ;;  %s4117_s17 = scalar_lea.vmem [#allocation11], %s2411_s15 }
  0x8a   : > { %s2493_s10 = sshll.u32 %s3316_s22, 11  ;;  %s2294_s8 = sshll.u32 %s4117_s17, 4  ;;  %s4152_s8 = int_to_ptr.vmem [resolvable:$true] %s2294_s8 }
  0x8b   : > { %2609 = vmatpush3.bf16.msra.mxu0 %v2914_v2  ;;  %2621 = vmatpush3.bf16.msra.mxu1 %v2915_v3  ;;  %s4150_s24 = scalar_lea.hbm %s4207_s5, %s2493_s10  ;;  %s2280_s22 = scalar_lea.sflag [#allocation5], %s3500_s29 }
  0x8c   : > { %s3175_s26 = scalar_lea.vmem %s4152_s8, 2048  ;;  %s3262_s23 = smov [#allocation11]  }
  0x8d   : > { %p3176_p10 = scmp.ne.s32.totalorder %s4152_s8, %s3175_s26  ;;  %s3179_s27 = sshll.u32 %s3262_s23, 4  ;;  %s3180_s27 = int_to_ptr.vmem [resolvable:$false] %s3179_s27 }
  0x8e   : > { %2611 = vmatmul.mubr.msk.bf16.vlgmr.msra.gmra.mrb[0].mxu0 %vm340_vm0, %v2918_v6  ;;  %2623 = vmatmul.mubr.msk.bf16.vlgmr.msra.gmra.mrb[0].mxu1 %vm340_vm0, %v2919_v7  ;;  %p3182_p12 = scmp.lt.s32.totalorder %s4152_s8, %s3180_s27 }
  0x8f   : > { %2626 = vmatprep.mubr.msk.bf16.mxu1 %vm340_vm0, %v2920_v8  ;;  %2614 = vmatprep.mubr.msk.bf16.mxu0 %vm340_vm0, %v2922_v9  ;;  %p3177_p3 = pnand %p3176_p10, %p3449_p5 }
  0x91   : > { %p3178_p7 = pneg %p3177_p3 }
  0x96   : > { %2615 = vmatmul.mubr.msk.bf16.gmra.mrb[4].mxu0 %vm340_vm0, %v2923_v10  ;;  %2627 = vmatmul.mubr.msk.bf16.gmra.mrb[4].mxu1 %vm340_vm0, %v2921_v11 }
 0x161   : > { %v2612_v13 = vpop.f32.mrb[0].mxu0  ;;  %v2624_v16 = vpop.f32.mrb[0].mxu1 }
 0x162   : > { %v387_v15 = vpop.f32.mrb[1].mxu0  ;;  %v532_v18 = vadd.f32 %v2624_v16, %v2423_v12  ;;  %v523_v19 = vpop.f32.mrb[1].mxu1  ;;  %v396_v20 = vadd.f32 %v2612_v13, %v2412_v14  ;;  %v2495_v16 = vld [vmem:[#allocation8] sm:$0xff]  }
 0x163   : > { %v2613_v17 = vpop.f32.mrb[2].mxu0  ;;  %v524_v23 = vadd.f32 %v2423_v12, %v523_v19  ;;  %v2625_v24 = vpop.f32.mrb[2].mxu1  ;;  %v388_v25 = vadd.f32 %v2412_v14, %v387_v15  ;;  %v2510_v15 = vld [vmem:[#allocation8 + $0x8] sm:$0xff]  }
 0x164   : > { %v399_v21 = vadd.f32 %v2613_v17, %v2412_v14  ;;  %v390_v22 = vpop.f32.mrb[3].mxu0  ;;  %v535_v27 = vadd.f32 %v2625_v24, %v2423_v12  ;;  %v526_v28 = vpop.f32.mrb[3].mxu1  ;;  %v2500_v17 = vunpack.c.l.bf16 %v2510_v15 }
 0x165   : > { %v391_v26 = vadd.f32 %v2412_v14, %v390_v22  ;;  %v527_v30 = vadd.f32 %v2423_v12, %v526_v28  ;;  %v2497_v28 = vunpack.c.h.bf16 %v2495_v16 }
 0x166   : > { %v419_v29 = vpack.c.bf16 %v399_v21, %v396_v20  ;;  %v555_v32 = vpack.c.bf16 %v535_v27, %v532_v18  ;;  %v2496_v18 = vunpack.c.l.bf16 %v2495_v16 }
 0x167   : > { %v418_v31 = vpack.c.bf16 %v391_v26, %v388_v25  ;;  %v554_v33 = vpack.c.bf16 %v527_v30, %v524_v23 }
 0x168   : > { %424 = vst.msk [vmem:[#allocation2 + $0x10] sm:$0xff] %vm422_vm1, %v419_v29  ;;  %559 = vst.msk [vmem:[#allocation2 + $0x18] sm:$0xff] %vm422_vm1, %v555_v32  ;;  %v2501_v32 = vunpack.c.h.bf16 %v2510_v15 }
 0x169   : > { %423 = vst.msk [vmem:[#allocation2] sm:$0xff] %vm422_vm1, %v418_v31  ;;  %v2616_v34 = vpop.f32.mrb[4].mxu0  ;;  %558 = vst.msk [vmem:[#allocation2 + $0x8] sm:$0xff] %vm422_vm1, %v554_v33  ;;  %v2628_v35 = vpop.f32.mrb[4].mxu1 }
 0x16a   : > { %v412_v36 = vadd.f32 %v2616_v34, %v2412_v14  ;;  %v403_v37 = vpop.f32.mrb[5].mxu0  ;;  %v548_v38 = vadd.f32 %v2628_v35, %v2423_v12  ;;  %v539_v39 = vpop.f32.mrb[5].mxu1 }
 0x16b   : > { %v404_v40 = vadd.f32 %v2412_v14, %v403_v37  ;;  %v2617_v41 = vpop.f32.mrb[6].mxu0  ;;  %v540_v42 = vadd.f32 %v2423_v12, %v539_v39  ;;  %v2629_v43 = vpop.f32.mrb[6].mxu1 }
 0x16c   : > { %v415_v44 = vadd.f32 %v2617_v41, %v2412_v14  ;;  %v406_v45 = vpop.f32.mrb[7].mxu0  ;;  %v551_v46 = vadd.f32 %v2629_v43, %v2423_v12  ;;  %v542_v47 = vpop.f32.mrb[7].mxu1 }
 0x16d   : > { %v407_v48 = vadd.f32 %v2412_v14, %v406_v45  ;;  %v543_v49 = vadd.f32 %v2423_v12, %v542_v47 }
 0x16e   : > { %v421_v50 = vpack.c.bf16 %v415_v44, %v412_v36  ;;  %v557_v51 = vpack.c.bf16 %v551_v46, %v548_v38 }
 0x16f   : > { %v420_v52 = vpack.c.bf16 %v407_v48, %v404_v40  ;;  %v3544_v53 = vld [vmem:[#allocation2 + $0x10] sm:$0xff]  ;;  %v556_v54 = vpack.c.bf16 %v543_v49, %v540_v42  ;;  %v3557_v56 = vld [vmem:[#allocation2 + $0x18] sm:$0xff] }
 0x170   : > { %426 = vst.msk [vmem:[#allocation2 + $0x30] sm:$0xff] %vm422_vm1, %v421_v50  ;;  %648 = vrot.lane.b32.xlu1 %v3544_v53, %s3257_s13  ;;  %2642 = vmatprep.mubr.msk.bf16.mxu1 %vm584_vm2, %v3544_v53  ;;  %v3550_v55 = vld [vmem:[#allocation2] sm:$0xff]  ;;  %561 = vst.msk [vmem:[#allocation2 + $0x38] sm:$0xff] %vm422_vm1, %v557_v51  ;;  %v3560_v57 = vld [vmem:[#allocation2 + $0x8] sm:$0xff] }
 0x171   : > { %425 = vst.msk [vmem:[#allocation2 + $0x20] sm:$0xff] %vm422_vm1, %v420_v52  ;;  %580 = vrot.lane.b32.xlu0 %v3550_v55, %s3257_s13  ;;  %2634 = vmatprep.mubr.msk.bf16.mxu0 %vm584_vm2, %v3550_v55  ;;  %560 = vst.msk [vmem:[#allocation2 + $0x28] sm:$0xff] %vm422_vm1, %v556_v54 }
 0x174   : > { %650 = vrot.lane.b32.xlu1 %v3557_v56, %s3257_s13 }
 0x175   : > { %582 = vrot.lane.b32.xlu0 %v3560_v57, %s3257_s13 }
 0x177   : > { %v3570_v60 = vld [vmem:[#allocation2 + $0x30] sm:$0xff]  ;;  %v3572_v61 = vld [vmem:[#allocation2 + $0x38] sm:$0xff] }
 0x178   : > { %v3564_v58 = vld [vmem:[#allocation2 + $0x20] sm:$0xff]  ;;  %v3566_v59 = vld [vmem:[#allocation2 + $0x28] sm:$0xff] }
 0x179   : > { %715 = vrot.lane.b32.xlu0 %v3564_v58, %s3257_s13  ;;  %717 = vrot.lane.b32.xlu1 %v3566_v59, %s3257_s13 }
 0x17d   : > { %782 = vrot.lane.b32.xlu0 %v3570_v60, %s3257_s13  ;;  %784 = vrot.lane.b32.xlu1 %v3572_v61, %s3257_s13  ;;  %s3181_s13 = scalar_lea.vmem %s3180_s27, 4096 }
 0x17e   : > { %p3183_p1 = scmp.lt.s32.totalorder %s3181_s13, %s3175_s26 }
 0x180   : > { %p3184_p2 = por %p3183_p1, %p3182_p12 }
 0x181   : > { %1031 = vrot.lane.b32.xlu1 %v3550_v55, %s3258_s16 }
 0x182   : > { %p3185_p4 = pnand %p3184_p2, %p3178_p7 }
 0x1e2   : > { %v649_v62 = vpop.permute.xlu1 %648 }
 0x1e3   : > { %2812 = vmatprep.subr.msk.bf16.mxu1 %vm584_vm2, %v649_v62  ;;  %v581_v63 = vpop.permute.xlu0 %580  ;;  %v659_v0 = vsel %vm584_vm2, %v649_v62, 0 }
 0x1e4   : > { %2810 = vmatprep.subr.msk.bf16.mxu0 %vm584_vm2, %v581_v63  ;;  %2639 = vmatpush3.bf16.xpose.msra.mxu1 %v659_v0  ;;  %v592_v1 = vsel %vm584_vm2, %v581_v63, 0 }
 0x1e5   : > { %2631 = vmatpush3.bf16.xpose.msra.mxu0 %v592_v1 }
 0x1e6   : > { %v651_v2 = vpop.permute.xlu1 %650 }
 0x1e7   : > { %v583_v3 = vpop.permute.xlu0 %582  ;;  %2813 = vmatprep.subr.msk.bf16.mxu1 %vm584_vm2, %v651_v2  ;;  %v662_v4 = vsel %vm584_vm2, %v651_v2, 0 }
 0x1e8   : > { %2811 = vmatprep.subr.msk.bf16.mxu0 %vm584_vm2, %v583_v3  ;;  %v595_v6 = vsel %vm584_vm2, %v583_v3, 0 }
 0x1eb   : > { %v716_v5 = vpop.permute.xlu0 %715  ;;  %v718_v7 = vpop.permute.xlu1 %717 }
 0x1ec   : > { %2641 = vmatpush3.bf16.xpose.msra.mxu1 %v662_v4  ;;  %v726_v10 = vsel %vm584_vm2, %v716_v5, 0  ;;  %v729_v13 = vsel %vm584_vm2, %v718_v7, 0 }
 0x1ed   : > { %2633 = vmatpush3.bf16.xpose.msra.mxu0 %v595_v6 }
 0x1ee   : > { %2814 = vmatprep.subr.msk.bf16.mxu0 %vm584_vm2, %v716_v5 }
 0x1ef   : > { %v783_v8 = vpop.permute.xlu0 %782  ;;  %v785_v11 = vpop.permute.xlu1 %784 }
 0x1f0   : > { %2816 = vmatprep.subr.msk.bf16.mxu1 %vm584_vm2, %v783_v8  ;;  %v793_v9 = vsel %vm584_vm2, %v783_v8, 0  ;;  %v796_v12 = vsel %vm584_vm2, %v785_v11, 0 }
 0x1f3   : > { %2643 = vmatmul.mubr.msk.bf16.vlgmr.msra.gmra.mrb[8].mxu1 %vm584_vm2, %v3557_v56  ;;  %v1032_v14 = vpop.permute.xlu1 %1031 }
 0x1f4   : > { %2635 = vmatmul.mubr.msk.bf16.vlgmr.msra.gmra.mrb[8].mxu0 %vm584_vm2, %v3560_v57  ;;  %2655 = vmatpush3.bf16.xpose.msra.mxu1 %v793_v9 }
 0x1f5   : > { %2658 = vmatprep.mubr.msk.bf16.mxu1 %vm584_vm2, %v3570_v60  ;;  %2647 = vmatpush3.bf16.xpose.msra.mxu0 %v726_v10 }
 0x1f6   : > { %2650 = vmatprep.mubr.msk.bf16.mxu0 %vm584_vm2, %v3564_v58  ;;  %2817 = vmatprep.subr.msk.bf16.mxu1 %vm584_vm2, %v785_v11 }
 0x1f7   : > { %2815 = vmatprep.subr.msk.bf16.mxu0 %vm584_vm2, %v718_v7 }
 0x1fc   : > { %2657 = vmatpush3.bf16.xpose.msra.mxu1 %v796_v12 }
 0x1fd   : > { %2649 = vmatpush3.bf16.xpose.msra.mxu0 %v729_v13 }
 0x1fe   : > { %2662 = vmatprep.subr.bf16.mxu0 %v1032_v14 }
 0x203   : > { %2659 = vmatmul.mubr.msk.bf16.vlgmr.msra.gmra.mrb[12].mxu1 %vm584_vm2, %v3572_v61 }
 0x204   : > { %2651 = vmatmul.mubr.msk.bf16.vlgmr.msra.gmra.mrb[12].mxu0 %vm584_vm2, %v3566_v59 }
 0x205   : > { %2663 = vmatpush3.bf16.msra.mxu0 %v1032_v14 }
 0x2c6   : > { %v2644_v19 = vpop.f32.mrb[8].mxu1 }
 0x2c7   : > { %v3606_v20 = vadd.f32 %v2644_v19, %v2500_v17  ;;  %v2636_v21 = vpop.f32.mrb[8].mxu0  ;;  %v698_v22 = vpop.f32.mrb[9].mxu1 }
 0x2c8   : > { %v3608_v23 = vadd.f32 %v2636_v21, %v2500_v17  ;;  %v631_v24 = vpop.f32.mrb[9].mxu0  ;;  %v2645_v25 = vpop.f32.mrb[10].mxu1  ;;  %v3610_v26 = vadd.f32 %v2496_v18, %v698_v22 }
 0x2c9   : > { %v2637_v27 = vpop.f32.mrb[10].mxu0  ;;  %v701_v29 = vpop.f32.mrb[11].mxu1  ;;  %v865_v30 = vsel %vm340_vm0, %v3606_v20, -inf  ;;  %v3614_v31 = vadd.f32 %v2496_v18, %v631_v24  ;;  %v3622_v37 = vadd.f32 %v2645_v25, %v2501_v32 }
 0x2ca   : > { %866 = vmax.xlane.f32.xlu1 %v865_v30  ;;  %v634_v33 = vpop.f32.mrb[11].mxu0  ;;  %v853_v34 = vsel %vm340_vm0, %v3608_v23, -inf  ;;  %v859_v36 = vsel %vm340_vm0, %v3610_v26, -inf  ;;  %v3628_v40 = vadd.f32 %v2637_v27, %v2501_v32  ;;  %v3632_v42 = vadd.f32 %v2497_v28, %v701_v29 }
 0x2cb   : > { %854 = vmax.xlane.f32.xlu0 %v853_v34  ;;  %v3618_v35 = vadd.f32 %v2497_v28, %v634_v33  ;;  %v847_v38 = vsel %vm340_vm0, %v3614_v31, -inf  ;;  %v868_v41 = vsel %vm340_vm0, %v3622_v37, -inf }
 0x2cc   : > { %v856_v44 = vsel %vm340_vm0, %v3628_v40, -inf  ;;  %v862_v0 = vsel %vm340_vm0, %v3632_v42, -inf }
 0x2cd   : > { %v850_v39 = vsel %vm340_vm0, %v3618_v35, -inf }
 0x2ce   : > { %860 = vmax.xlane.f32.xlu1 %v859_v36 }
 0x2cf   : > { %848 = vmax.xlane.f32.xlu0 %v847_v38 }
 0x2d2   : > { %851 = vmax.xlane.f32.xlu1 %v850_v39 }
 0x2d3   : > { %869 = vmax.xlane.f32.xlu0 %v868_v41 }
 0x2d6   : > { %v2660_v43 = vpop.f32.mrb[12].mxu1 }
 0x2d7   : > { %v3636_v45 = vadd.f32 %v2660_v43, %v2500_v17  ;;  %v2652_v46 = vpop.f32.mrb[12].mxu0  ;;  %v832_v47 = vpop.f32.mrb[13].mxu1  ;;  %857 = vmax.xlane.f32.xlu0 %v856_v44 }
 0x2d8   : > { %v765_v48 = vpop.f32.mrb[13].mxu0  ;;  %v2661_v49 = vpop.f32.mrb[14].mxu1  ;;  %v3638_v50 = vadd.f32 %v2652_v46, %v2500_v17  ;;  %v3646_v1 = vadd.f32 %v2496_v18, %v832_v47 }
 0x2d9   : > { %v2653_v51 = vpop.f32.mrb[14].mxu0  ;;  %v835_v52 = vpop.f32.mrb[15].mxu1  ;;  %v889_v54 = vsel %vm340_vm0, %v3636_v45, -inf  ;;  %v3642_v62 = vadd.f32 %v2661_v49, %v2501_v32  ;;  %v3654_v5 = vadd.f32 %v2496_v18, %v765_v48 }
 0x2da   : > { %v768_v63 = vpop.f32.mrb[15].mxu0  ;;  %890 = vmax.xlane.f32.xlu1 %v889_v54  ;;  %v877_v2 = vsel %vm340_vm0, %v3638_v50, -inf  ;;  %v3650_v3 = vadd.f32 %v2653_v51, %v2501_v32  ;;  %v883_v6 = vsel %vm340_vm0, %v3646_v1, -inf  ;;  %v3658_v7 = vadd.f32 %v2497_v28, %v835_v52 }
 0x2db   : > { %863 = vmax.xlane.f32.xlu0 %v862_v0  ;;  %v892_v4 = vsel %vm340_vm0, %v3642_v62, -inf  ;;  %v871_v9 = vsel %vm340_vm0, %v3654_v5, -inf  ;;  %v3664_v10 = vadd.f32 %v2497_v28, %v768_v63 }
 0x2dc   : > { %v880_v8 = vsel %vm340_vm0, %v3650_v3, -inf  ;;  %v886_v11 = vsel %vm340_vm0, %v3658_v7, -inf }
 0x2dd   : > { %v874_v12 = vsel %vm340_vm0, %v3664_v10, -inf }
 0x2de   : > { %878 = vmax.xlane.f32.xlu1 %v877_v2 }
 0x2df   : > { %893 = vmax.xlane.f32.xlu0 %v892_v4 }
 0x2e2   : > { %884 = vmax.xlane.f32.xlu1 %v883_v6 }
 0x2e3   : > { %881 = vmax.xlane.f32.xlu0 %v880_v8 }
 0x2e6   : > { %872 = vmax.xlane.f32.xlu1 %v871_v9 }
 0x2e7   : > { %887 = vmax.xlane.f32.xlu0 %v886_v11 }
 0x2eb   : > { %875 = vmax.xlane.f32.xlu0 %v874_v12 }
 0x2f7   : > { %1092 = vrot.lane.b32.xlu1 %v3544_v53, %s3258_s16 }
 0x2fb   : > { %1153 = vrot.lane.b32.xlu1 %v3564_v58, %s3258_s16 }
 0x2ff   : > { %1094 = vrot.lane.b32.xlu1 %v3557_v56, %s3258_s16 }
 0x301   : > { %1033 = vrot.lane.b32.xlu0 %v3560_v57, %s3258_s16 }
 0x303   : > { %1155 = vrot.lane.b32.xlu1 %v3566_v59, %s3258_s16 }
 0x305   : > { %1214 = vrot.lane.b32.xlu0 %v3570_v60, %s3258_s16 }
 0x357   : > { %v867_v13 = vpop.xlane.xlu1 %866 }
 0x358   : > { %v901_v14 = vsub.f32 %v3606_v20, %v867_v13  ;;  %v855_v15 = vpop.xlane.xlu0 %854 }
 0x359   : > { %v897_v16 = vsub.f32 %v3608_v23, %v855_v15 }
 0x35a   : > { %v923_v17 = vmul.f32 1.442695, %v901_v14 }
 0x35b   : > { %v915_v18 = vmul.f32 1.442695, %v897_v16  ;;  %v861_v19 = vpop.xlane.xlu1 %860 }
 0x35c   : > { %2926 = vpow2.f32 %v923_v17  ;;  %v899_v21 = vsub.f32 %v3610_v26, %v861_v19  ;;  %v849_v22 = vpop.xlane.xlu0 %848 }
 0x35d   : > { %2928 = vpow2.f32 %v915_v18  ;;  %v895_v25 = vsub.f32 %v3614_v31, %v849_v22 }
 0x35e   : > { %v919_v24 = vmul.f32 1.442695, %v899_v21 }
 0x35f   : > { %v911_v29 = vmul.f32 1.442695, %v895_v25  ;;  %v852_v20 = vpop.xlane.xlu1 %851 }
 0x360   : > { %v870_v27 = vpop.xlane.xlu0 %869  ;;  %2930 = vpow2.f32 %v919_v24  ;;  %v896_v26 = vsub.f32 %v3618_v35, %v852_v20 }
 0x361   : > { %v902_v28 = vsub.f32 %v3622_v37, %v870_v27 }
 0x362   : > { %v913_v41 = vmul.f32 1.442695, %v896_v26 }
 0x363   : > { %v925_v30 = vmul.f32 1.442695, %v902_v28 }
 0x364   : > { %v858_v32 = vpop.xlane.xlu0 %857 }
 0x365   : > { %2932 = vpow2.f32 %v925_v30  ;;  %v898_v23 = vsub.f32 %v3628_v40, %v858_v32 }
 0x366   : > { %v3688_v33 = vpop.eup %2926  ;;  %2934 = vpow2.f32 %v911_v29 }
 0x367   : > { %v917_v34 = vmul.f32 1.442695, %v898_v23  ;;  %v891_v36 = vpop.xlane.xlu1 %890  ;;  %v961_v31 = vsel %vm340_vm0, %v3688_v33, 0.0  ;;  %v3693_v38 = vpop.eup %2928 }
 0x368   : > { %962 = vadd.xlane.f32.xlu1 %v961_v31  ;;  %v864_v37 = vpop.xlane.xlu0 %863  ;;  %v909_v40 = vsub.f32 %v3636_v45, %v891_v36  ;;  %v949_v35 = vsel %vm340_vm0, %v3693_v38, 0.0 }
 0x369   : > { %2936 = vpow2.f32 %v917_v34  ;;  %v900_v39 = vsub.f32 %v3632_v42, %v864_v37 }
 0x36a   : > { %v3699_v46 = vpop.eup %2930  ;;  %v939_v42 = vmul.f32 1.442695, %v909_v40 }
 0x36b   : > { %v921_v43 = vmul.f32 1.442695, %v900_v39  ;;  %v879_v44 = vpop.xlane.xlu1 %878  ;;  %v955_v54 = vsel %vm340_vm0, %v3699_v46, 0.0 }
 0x36c   : > { %v905_v47 = vsub.f32 %v3638_v50, %v879_v44  ;;  %950 = vadd.xlane.f32.xlu1 %v949_v35  ;;  %v894_v48 = vpop.xlane.xlu0 %893 }
 0x36d   : > { %2938 = vpow2.f32 %v921_v43  ;;  %v910_v52 = vsub.f32 %v3642_v62, %v894_v48 }
 0x36e   : > { %v931_v49 = vmul.f32 1.442695, %v905_v47  ;;  %2940 = vpow2.f32 %v913_v41 }
 0x36f   : > { %v3702_v51 = vpop.eup %2932  ;;  %v885_v45 = vpop.xlane.xlu1 %884  ;;  %v941_v62 = vmul.f32 1.442695, %v910_v52 }
 0x370   : > { %v3707_v63 = vpop.eup %2934  ;;  %2942 = vpow2.f32 %v931_v49  ;;  %v907_v0 = vsub.f32 %v3646_v1, %v885_v45  ;;  %956 = vadd.xlane.f32.xlu1 %v955_v54  ;;  %v882_v50 = vpop.xlane.xlu0 %881  ;;  %v964_v2 = vsel %vm340_vm0, %v3702_v51, 0.0 }
 0x371   : > { %965 = vadd.xlane.f32.xlu0 %v964_v2  ;;  %2944 = vpow2.f32 %v939_v42  ;;  %v906_v8 = vsub.f32 %v3650_v3, %v882_v50  ;;  %v943_v11 = vsel %vm340_vm0, %v3707_v63, 0.0 }
 0x372   : > { %v935_v4 = vmul.f32 1.442695, %v907_v0 }
 0x373   : > { %v3712_v6 = vpop.eup %2936  ;;  %v873_v9 = vpop.xlane.xlu1 %872  ;;  %v933_v16 = vmul.f32 1.442695, %v906_v8 }
 0x374   : > { %2946 = vpow2.f32 %v935_v4  ;;  %v903_v1 = vsub.f32 %v3654_v5, %v873_v9  ;;  %944 = vadd.xlane.f32.xlu1 %v943_v11  ;;  %v888_v12 = vpop.xlane.xlu0 %887  ;;  %v952_v13 = vsel %vm340_vm0, %v3712_v6, 0.0 }
 0x375   : > { %953 = vadd.xlane.f32.xlu0 %v952_v13  ;;  %2948 = vpow2.f32 %v941_v62  ;;  %v908_v3 = vsub.f32 %v3658_v7, %v888_v12 }
 0x376   : > { %v927_v14 = vmul.f32 1.442695, %v903_v1 }
 0x377   : > { %v3720_v15 = vpop.eup %2938  ;;  %v1093_v17 = vpop.permute.xlu1 %1092  ;;  %v937_v22 = vmul.f32 1.442695, %v908_v3 }
 0x378   : > { %2950 = vpow2.f32 %v927_v14  ;;  %2670 = vmatprep.subr.bf16.mxu1 %v1093_v17  ;;  %v876_v18 = vpop.xlane.xlu0 %875  ;;  %v958_v5 = vsel %vm340_vm0, %v3720_v15, 0.0  ;;  %v3725_v19 = vpop.eup %2940 }
 0x379   : > { %2671 = vmatpush3.bf16.msra.mxu1 %v1093_v17  ;;  %959 = vadd.xlane.f32.xlu0 %v958_v5  ;;  %2952 = vpow2.f32 %v933_v16  ;;  %v904_v24 = vsub.f32 %v3664_v10, %v876_v18  ;;  %v946_v28 = vsel %vm340_vm0, %v3725_v19, 0.0 }
 0x37a   : > { %v3727_v21 = vpop.eup %2942  ;;  %2954 = vpow2.f32 %v937_v22 }
 0x37b   : > { %v3730_v25 = vpop.permute.xlu1 %1153  ;;  %v973_v7 = vsel %vm340_vm0, %v3727_v21, 0.0  ;;  %v3736_v29 = vpop.eup %2944  ;;  %v929_v30 = vmul.f32 1.442695, %v904_v24 }
 0x37c   : > { %974 = vadd.xlane.f32.xlu1 %v973_v7  ;;  %v1034_v27 = vpop.permute.xlu0 %1033  ;;  %v985_v26 = vsel %vm340_vm0, %v3736_v29, 0.0 }
 0x37d   : > { %947 = vadd.xlane.f32.xlu0 %v946_v28  ;;  %2664 = vmatprep.subr.bf16.mxu0 %v1034_v27  ;;  %2956 = vpow2.f32 %v929_v30 }
 0x37e   : > { %v3738_v20 = vpop.eup %2946  ;;  %2665 = vmatpush3.bf16.msra.mxu0 %v1034_v27 }
 0x37f   : > { %v1095_v10 = vpop.permute.xlu1 %1094  ;;  %2678 = vmatprep.subr.bf16.mxu0 %v3730_v25  ;;  %v979_v32 = vsel %vm340_vm0, %v3738_v20, 0.0  ;;  %v3747_v34 = vpop.eup %2948 }
 0x380   : > { %2672 = vmatprep.subr.bf16.mxu1 %v1095_v10  ;;  %980 = vadd.xlane.f32.xlu1 %v979_v32  ;;  %v3743_v23 = vpop.permute.xlu0 %1214  ;;  %v988_v37 = vsel %vm340_vm0, %v3747_v34, 0.0 }
 0x381   : > { %2673 = vmatpush3.bf16.msra.mxu1 %v1095_v10  ;;  %986 = vadd.xlane.f32.xlu0 %v985_v26 }
 0x382   : > { %v3749_v36 = vpop.eup %2950  ;;  %2686 = vmatprep.subr.bf16.mxu1 %v3743_v23 }
 0x383   : > { %v967_v31 = vsel %vm340_vm0, %v3749_v36, 0.0  ;;  %v3756_v39 = vpop.eup %2952 }
 0x384   : > { %968 = vadd.xlane.f32.xlu1 %v967_v31  ;;  %v976_v41 = vsel %vm340_vm0, %v3756_v39, 0.0  ;;  %v3760_v40 = vpop.eup %2954 }
 0x385   : > { %989 = vadd.xlane.f32.xlu0 %v988_v37  ;;  %v982_v43 = vsel %vm340_vm0, %v3760_v40, 0.0 }
 0x387   : > { %v3764_v44 = vpop.eup %2956 }
 0x388   : > { %v970_v35 = vsel %vm340_vm0, %v3764_v44, 0.0 }
 0x389   : > { %977 = vadd.xlane.f32.xlu0 %v976_v41 }
 0x38d   : > { %983 = vadd.xlane.f32.xlu0 %v982_v43 }
 0x391   : > { %971 = vadd.xlane.f32.xlu0 %v970_v35 }
 0x395   : > { %1216 = vrot.lane.b32.xlu1 %v3572_v61, %s3258_s16 }
 0x399   : > { %1300 = vrot.lane.b32.xlu1 %v3560_v57, %s3259_s6 }
 0x39d   : > { %1294 = vrot.lane.b32.xlu1 %v3550_v55, %s3260_s28 }
 0x3a1   : > { %1369 = vrot.lane.b32.xlu1 %v3557_v56, %s3259_s6 }
 0x3a5   : > { %1363 = vrot.lane.b32.xlu1 %v3544_v53, %s3260_s28 }
 0x3a7   : > { %1298 = vrot.lane.b32.xlu0 %v3550_v55, %s3259_s6  ;;  %v3786_v55 = vpop.permute.xlu1 %1155 }
 0x3a9   : > { %1438 = vrot.lane.b32.xlu1 %v3566_v59, %s3259_s6 }
 0x3ab   : > { %1367 = vrot.lane.b32.xlu0 %v3544_v53, %s3259_s6 }
 0x3ad   : > { %1432 = vrot.lane.b32.xlu1 %v3564_v58, %s3260_s28 }
 0x3af   : > { %1296 = vrot.lane.b32.xlu0 %v3560_v57, %s3260_s28 }
 0x3b1   : > { %1507 = vrot.lane.b32.xlu1 %v3572_v61, %s3259_s6 }
 0x3b3   : > { %1436 = vrot.lane.b32.xlu0 %v3564_v58, %s3259_s6 }
 0x3b5   : > { %1503 = vrot.lane.b32.xlu1 %v3572_v61, %s3260_s28 }
 0x3b7   : > { %1365 = vrot.lane.b32.xlu0 %v3557_v56, %s3260_s28 }
 0x3bb   : > { %1505 = vrot.lane.b32.xlu0 %v3570_v60, %s3259_s6 }
 0x3bf   : > { %1434 = vrot.lane.b32.xlu0 %v3566_v59, %s3260_s28 }
 0x3c3   : > { %1501 = vrot.lane.b32.xlu0 %v3570_v60, %s3260_s28 }
 0x3f5   : > { %v963_v53 = vpop.xlane.xlu1 %962 }
 0x3f9   : > { %v951_v47 = vpop.xlane.xlu1 %950 }
 0x3fd   : > { %v957_v49 = vpop.xlane.xlu1 %956 }
 0x3fe   : > { %v966_v48 = vpop.xlane.xlu0 %965 }
 0x3ff   : > { %2958 = vrcp.f32 %v966_v48 }
 0x400   : > { %2960 = vrcp.f32 %v957_v49 }
 0x401   : > { %v945_v58 = vpop.xlane.xlu1 %944  ;;  %2962 = vrcp.f32 %v963_v53 }
 0x402   : > { %v954_v42 = vpop.xlane.xlu0 %953 }
 0x406   : > { %v960_v61 = vpop.xlane.xlu0 %959 }
 0x407   : > { %2964 = vrcp.f32 %v960_v61 }
 0x408   : > { %2966 = vrcp.f32 %v954_v42 }
 0x409   : > { %2968 = vrcp.f32 %v945_v58  ;;  %v975_v56 = vpop.xlane.xlu1 %974  ;;  %v2959_v52 = vpop.eup %2958 }
 0x40a   : > { %2970 = vrcp.f32 %v951_v47  ;;  %v948_v59 = vpop.xlane.xlu0 %947  ;;  %v2961_v54 = vpop.eup %2960  ;;  %v1014_v2 = vmul.f32 %v2959_v52, %v3702_v51 }
 0x40b   : > { %2972 = vrcp.f32 %v948_v59  ;;  %v2963_v0 = vpop.eup %2962  ;;  %v1011_v9 = vmul.f32 %v2961_v54, %v3699_v46 }
 0x40c   : > { %v1013_v12 = vmul.f32 %v2963_v0, %v3688_v33 }
 0x40d   : > { %v981_v60 = vpop.xlane.xlu1 %980 }
 0x40e   : > { %v987_v45 = vpop.xlane.xlu0 %986  ;;  %v1026_v18 = vpack.c.bf16 %v1014_v2, %v1013_v12 }
 0x411   : > { %v2965_v50 = vpop.eup %2964  ;;  %v969_v4 = vpop.xlane.xlu1 %968 }
 0x412   : > { %v2967_v62 = vpop.eup %2966  ;;  %v990_v8 = vpop.xlane.xlu0 %989  ;;  %v1012_v11 = vmul.f32 %v2965_v50, %v3720_v15 }
 0x413   : > { %v2969_v1 = vpop.eup %2968  ;;  %v1010_v3 = vmul.f32 %v2967_v62, %v3712_v6  ;;  %2974 = vrcp.f32 %v990_v8 }
 0x414   : > { %v2971_v13 = vpop.eup %2970  ;;  %v1025_v14 = vpack.c.bf16 %v1012_v11, %v1011_v9  ;;  %v1007_v5 = vmul.f32 %v2969_v1, %v3707_v63  ;;  %2976 = vrcp.f32 %v981_v60 }
 0x415   : > { %v2973_v16 = vpop.eup %2972  ;;  %v1217_v17 = vpop.permute.xlu1 %1216  ;;  %v1009_v46 = vmul.f32 %v2971_v13, %v3693_v38  ;;  %2978 = vrcp.f32 %v987_v45 }
 0x416   : > { %2674 = vmatprep.mubr.msk.bf16.mxu1 %vm340_vm0, %v1025_v14  ;;  %v978_v51 = vpop.xlane.xlu0 %977  ;;  %v1008_v22 = vmul.f32 %v2973_v16, %v3725_v19 }
 0x417   : > { %2675 = vmatmul.mubr.msk.bf16.vlgmr.msra.gmra.mrb[16].mxu1 %vm340_vm0, %v1026_v18  ;;  %v1024_v15 = vpack.c.bf16 %v1010_v3, %v1009_v46 }
 0x418   : > { %2687 = vmatpush3.bf16.msra.mxu1 %v3743_v23  ;;  %v1023_v33 = vpack.c.bf16 %v1008_v22, %v1007_v5 }
 0x419   : > { %2688 = vmatprep.subr.bf16.mxu1 %v1217_v17  ;;  %v3799_v6 = vpop.permute.xlu1 %1300 }
 0x41a   : > { %2666 = vmatprep.mubr.msk.bf16.mxu0 %vm340_vm0, %v1023_v33  ;;  %v984_v24 = vpop.xlane.xlu0 %983  ;;  %v1312_v60 = vsel %vm584_vm2, %v3799_v6, 0 }
 0x41b   : > { %2980 = vrcp.f32 %v984_v24  ;;  %2667 = vmatmul.mubr.msk.bf16.vlgmr.msra.gmra.mrb[16].mxu0 %vm340_vm0, %v1024_v15 }
 0x41c   : > { %2982 = vrcp.f32 %v978_v51  ;;  %2679 = vmatpush3.bf16.msra.mxu0 %v3730_v25  ;;  %2689 = vmatpush3.bf16.msra.mxu1 %v1217_v17 }
 0x41d   : > { %2984 = vrcp.f32 %v969_v4  ;;  %2680 = vmatprep.subr.bf16.mxu0 %v3786_v55  ;;  %v1295_v38 = vpop.permute.xlu1 %1294  ;;  %v2975_v19 = vpop.eup %2974 }
 0x41e   : > { %2986 = vrcp.f32 %v975_v56  ;;  %v972_v63 = vpop.xlane.xlu0 %971  ;;  %v2977_v27 = vpop.eup %2976  ;;  %v1022_v25 = vmul.f32 %v2975_v19, %v3747_v34 }
 0x41f   : > { %2988 = vrcp.f32 %v972_v63  ;;  %v2979_v28 = vpop.eup %2978  ;;  %v1019_v26 = vmul.f32 %v2977_v27, %v3738_v20 }
 0x420   : > { %2681 = vmatpush3.bf16.msra.mxu0 %v3786_v55  ;;  %v1021_v41 = vmul.f32 %v2979_v28, %v3736_v29  ;;  %v2511_v28 = vld [vmem:[#allocation8 + $0x18] sm:$0xff]  }
 0x421   : > { %v1370_v30 = vpop.permute.xlu1 %1369 }
 0x422   : > { %v1299_v7 = vpop.permute.xlu0 %1298  ;;  %v1030_v47 = vpack.c.bf16 %v1022_v25, %v1021_v41  ;;  %v1381_v61 = vsel %vm584_vm2, %v1370_v30, 0 }
 0x423   : > { %2818 = vmatprep.subr.msk.bf16.mxu0 %vm584_vm2, %v1299_v7 }
 0x425   : > { %v2981_v10 = vpop.eup %2980  ;;  %v1364_v48 = vpop.permute.xlu1 %1363 }
 0x426   : > { %v2983_v32 = vpop.eup %2982  ;;  %v1368_v23 = vpop.permute.xlu0 %1367  ;;  %v1020_v31 = vmul.f32 %v2981_v10, %v3760_v40  ;;  %v2508_v10 = vunpack.c.l.bf16 %v2511_v28 }
 0x427   : > { %v2985_v37 = vpop.eup %2984  ;;  %2820 = vmatprep.subr.msk.bf16.mxu1 %vm584_vm2, %v1368_v23  ;;  %v1018_v53 = vmul.f32 %v2983_v32, %v3756_v39  ;;  %v1378_v29 = vsel %vm584_vm2, %v1368_v23, 0 }
 0x428   : > { %v2987_v43 = vpop.eup %2986  ;;  %v1029_v35 = vpack.c.bf16 %v1020_v31, %v1019_v26  ;;  %v1015_v49 = vmul.f32 %v2985_v37, %v3749_v36  ;;  %v1309_v36 = vsel %vm584_vm2, %v1299_v7, 0 }
 0x429   : > { %v2989_v55 = vpop.eup %2988  ;;  %v1017_v40 = vmul.f32 %v2987_v43, %v3727_v21 }
 0x42a   : > { %2690 = vmatprep.mubr.msk.bf16.mxu1 %vm340_vm0, %v1029_v35  ;;  %v1297_v34 = vpop.permute.xlu0 %1296  ;;  %v1016_v20 = vmul.f32 %v2989_v55, %v3764_v44  ;;  %v1439_v44 = vpop.permute.xlu1 %1438 }
 0x42b   : > { %2691 = vmatmul.mubr.msk.bf16.vlgmr.msra.gmra.mrb[20].mxu1 %vm340_vm0, %v1030_v47  ;;  %v1028_v39 = vpack.c.bf16 %v1018_v53, %v1017_v40  ;;  %v1450_v4 = vsel %vm584_vm2, %v1439_v44, 0 }
 0x42c   : > { %2703 = vmatpush3.bf16.xpose.msra.mxu1 %v1378_v29  ;;  %2706 = vmatprep.mubr.msk.bf16.mxu1 %vm584_vm2, %v1364_v48  ;;  %v1027_v42 = vpack.c.bf16 %v1016_v20, %v1015_v49 }
 0x42d   : > { %2821 = vmatprep.subr.msk.bf16.mxu1 %vm584_vm2, %v1370_v30  ;;  %v2503_v30 = vld [vmem:[#allocation8 + $0x10] sm:$0xff]  }
 0x42e   : > { %2682 = vmatprep.mubr.msk.bf16.mxu0 %vm340_vm0, %v1027_v42  ;;  %v1437_v58 = vpop.permute.xlu0 %1436  ;;  %v1433_v56 = vpop.permute.xlu1 %1432  ;;  %v2504_v25 = vunpack.c.l.bf16 %v2503_v30  ;;  %v2505_v47 = vunpack.c.h.bf16 %v2503_v30  ;;  %v2509_v42 = vunpack.c.h.bf16 %v2511_v28 }
 0x42f   : > { %2683 = vmatmul.mubr.msk.bf16.vlgmr.msra.gmra.mrb[20].mxu0 %vm340_vm0, %v1028_v39  ;;  %v1447_v50 = vsel %vm584_vm2, %v1437_v58, 0 }
 0x430   : > { %2695 = vmatpush3.bf16.xpose.msra.mxu0 %v1309_v36  ;;  %2698 = vmatprep.mubr.msk.bf16.mxu0 %vm584_vm2, %v1295_v38 }
 0x431   : > { %2819 = vmatprep.subr.msk.bf16.mxu0 %vm584_vm2, %v3799_v6 }
 0x432   : > { %v1366_v21 = vpop.permute.xlu0 %1365  ;;  %v1508_v54 = vpop.permute.xlu1 %1507 }
 0x433   : > { %v1519_v2 = vsel %vm584_vm2, %v1508_v54, 0 }
 0x434   : > { %2705 = vmatpush3.bf16.xpose.msra.mxu1 %v1381_v61 }
 0x436   : > { %v1506_v59 = vpop.permute.xlu0 %1505  ;;  %v1504_v62 = vpop.permute.xlu1 %1503 }
 0x437   : > { %2824 = vmatprep.subr.msk.bf16.mxu1 %vm584_vm2, %v1506_v59  ;;  %v1516_v45 = vsel %vm584_vm2, %v1506_v59, 0 }
 0x438   : > { %2697 = vmatpush3.bf16.xpose.msra.mxu0 %v1312_v60 }
 0x439   : > { %2822 = vmatprep.subr.msk.bf16.mxu0 %vm584_vm2, %v1437_v58 }
 0x43a   : > { %v1435_v52 = vpop.permute.xlu0 %1434 }
 0x43b   : > { %2707 = vmatmul.mubr.msk.bf16.vlgmr.msra.gmra.mrb[24].mxu1 %vm584_vm2, %v1366_v21 }
 0x43c   : > { %2719 = vmatpush3.bf16.xpose.msra.mxu1 %v1516_v45 }
 0x43d   : > { %2825 = vmatprep.subr.msk.bf16.mxu1 %vm584_vm2, %v1508_v54 }
 0x43e   : > { %v1502_v0 = vpop.permute.xlu0 %1501 }
 0x43f   : > { %2699 = vmatmul.mubr.msk.bf16.vlgmr.msra.gmra.mrb[24].mxu0 %vm584_vm2, %v1297_v34  ;;  %2722 = vmatprep.mubr.msk.bf16.mxu1 %vm584_vm2, %v1502_v0 }
 0x440   : > { %2711 = vmatpush3.bf16.xpose.msra.mxu0 %v1447_v50  ;;  %2714 = vmatprep.mubr.msk.bf16.mxu0 %vm584_vm2, %v1433_v56 }
 0x441   : > { %2823 = vmatprep.subr.msk.bf16.mxu0 %vm584_vm2, %v1439_v44 }
 0x444   : > { %2721 = vmatpush3.bf16.xpose.msra.mxu1 %v1519_v2 }
 0x448   : > { %2713 = vmatpush3.bf16.xpose.msra.mxu0 %v1450_v4 }
 0x44b   : > { %2723 = vmatmul.mubr.msk.bf16.vlgmr.msra.gmra.mrb[28].mxu1 %vm584_vm2, %v1504_v62 }
 0x44f   : > { %2715 = vmatmul.mubr.msk.bf16.vlgmr.msra.gmra.mrb[28].mxu0 %vm584_vm2, %v1435_v52 }
 0x4ea   : > { %v3844_v8 = vpop.f32.mrb[16].mxu1 }
 0x4eb   : > { %v3846_v9 = vpop.f32.mrb[17].mxu1 }
 0x4ec   : > { %v3848_v11 = vpop.f32.mrb[18].mxu1 }
 0x4ed   : > { %v1278_v1 = vpack.c.bf16 %v3848_v11, %v3844_v8  ;;  %v3852_v12 = vpop.f32.mrb[19].mxu1  ;;  %v2925_v8 = vld [vmem:[#allocation9 + $0x8] sm:$0xff]  }
 0x4ee   : > { %v1277_v13 = vpack.c.bf16 %v3852_v12, %v3846_v9  ;;  %v3856_v14 = vpop.f32.mrb[16].mxu0 }
 0x4ef   : > { %v3858_v16 = vpop.f32.mrb[17].mxu0 }
 0x4f0   : > { %v3860_v3 = vpop.f32.mrb[18].mxu0 }
 0x4f1   : > { %v1276_v17 = vpack.c.bf16 %v3860_v3, %v3856_v14  ;;  %v3864_v18 = vpop.f32.mrb[19].mxu0 }
 0x4f2   : > { %v1275_v51 = vpack.c.bf16 %v3864_v18, %v3858_v16 }
 0x4fe   : > { %v3868_v5 = vpop.f32.mrb[20].mxu1 }
 0x4ff   : > { %v3870_v22 = vpop.f32.mrb[21].mxu1 }
 0x500   : > { %v3872_v46 = vpop.f32.mrb[22].mxu1 }
 0x501   : > { %v1282_v33 = vpack.c.bf16 %v3872_v46, %v3868_v5  ;;  %v3876_v6 = vpop.f32.mrb[23].mxu1 }
 0x502   : > { %v1281_v15 = vpack.c.bf16 %v3876_v6, %v3870_v22  ;;  %v3880_v24 = vpop.f32.mrb[20].mxu0 }
 0x503   : > { %v3882_v38 = vpop.f32.mrb[21].mxu0 }
 0x504   : > { %v3884_v63 = vpop.f32.mrb[22].mxu0 }
 0x505   : > { %v1280_v19 = vpack.c.bf16 %v3884_v63, %v3880_v24  ;;  %v3888_v7 = vpop.f32.mrb[23].mxu0 }
 0x506   : > { %v1279_v27 = vpack.c.bf16 %v3888_v7, %v3882_v38 }
 0x50e   : > { %v2708_v32 = vpop.f32.mrb[24].mxu1 }
 0x50f   : > { %v3892_v23 = vadd.f32 %v2708_v32, %v2508_v10  ;;  %v1417_v26 = vpop.f32.mrb[25].mxu1 }
 0x510   : > { %v2709_v31 = vpop.f32.mrb[26].mxu1  ;;  %v3894_v37 = vadd.f32 %v2504_v25, %v1417_v26 }
 0x511   : > { %v1420_v41 = vpop.f32.mrb[27].mxu1  ;;  %v1588_v43 = vsel %vm340_vm0, %v3892_v23, -inf  ;;  %v3918_v60 = vadd.f32 %v2709_v31, %v2509_v42 }
 0x512   : > { %v2700_v35 = vpop.f32.mrb[24].mxu0  ;;  %1589 = vmax.xlane.f32.xlu1 %v1588_v43  ;;  %v1582_v40 = vsel %vm340_vm0, %v3894_v37, -inf  ;;  %v3914_v44 = vadd.f32 %v2505_v47, %v1420_v41 }
 0x513   : > { %v3898_v55 = vadd.f32 %v2700_v35, %v2508_v10  ;;  %v1348_v53 = vpop.f32.mrb[25].mxu0  ;;  %v1591_v28 = vsel %vm340_vm0, %v3918_v60, -inf }
 0x514   : > { %v2701_v48 = vpop.f32.mrb[26].mxu0  ;;  %v3900_v34 = vadd.f32 %v2504_v25, %v1348_v53  ;;  %v1585_v45 = vsel %vm340_vm0, %v3914_v44, -inf }
 0x515   : > { %v1351_v49 = vpop.f32.mrb[27].mxu0  ;;  %v1576_v20 = vsel %vm340_vm0, %v3898_v55, -inf  ;;  %v3910_v58 = vadd.f32 %v2701_v48, %v2509_v42 }
 0x516   : > { %v3906_v29 = vadd.f32 %v2505_v47, %v1351_v49  ;;  %1577 = vmax.xlane.f32.xlu0 %v1576_v20  ;;  %1583 = vmax.xlane.f32.xlu1 %v1582_v40  ;;  %v1570_v36 = vsel %vm340_vm0, %v3900_v34, -inf }
 0x517   : > { %v1579_v21 = vsel %vm340_vm0, %v3910_v58, -inf }
 0x518   : > { %v1573_v39 = vsel %vm340_vm0, %v3906_v29, -inf }
 0x51a   : > { %1571 = vmax.xlane.f32.xlu0 %v1570_v36  ;;  %1574 = vmax.xlane.f32.xlu1 %v1573_v39 }
 0x51e   : > { %1580 = vmax.xlane.f32.xlu0 %v1579_v21  ;;  %v2724_v61 = vpop.f32.mrb[28].mxu1 }
 0x51f   : > { %v1555_v56 = vpop.f32.mrb[29].mxu1  ;;  %v3940_v35 = vadd.f32 %v2724_v61, %v2508_v10 }
 0x520   : > { %v2725_v59 = vpop.f32.mrb[30].mxu1  ;;  %v3934_v31 = vadd.f32 %v2504_v25, %v1555_v56 }
 0x521   : > { %v1558_v52 = vpop.f32.mrb[31].mxu1  ;;  %v1612_v40 = vsel %vm340_vm0, %v3940_v35, -inf }
 0x522   : > { %1586 = vmax.xlane.f32.xlu0 %v1585_v45  ;;  %v2716_v54 = vpop.f32.mrb[28].mxu0  ;;  %v3942_v53 = vadd.f32 %v2505_v47, %v1558_v52  ;;  %v1606_v49 = vsel %vm340_vm0, %v3934_v31, -inf }
 0x523   : > { %v3922_v0 = vadd.f32 %v2716_v54, %v2508_v10  ;;  %v1486_v50 = vpop.f32.mrb[29].mxu0 }
 0x524   : > { %v2717_v2 = vpop.f32.mrb[30].mxu0  ;;  %v3924_v4 = vadd.f32 %v2504_v25, %v1486_v50  ;;  %v3948_v25 = vadd.f32 %v2725_v59, %v2509_v42  ;;  %v1609_v20 = vsel %vm340_vm0, %v3942_v53, -inf }
 0x525   : > { %v1489_v62 = vpop.f32.mrb[31].mxu0  ;;  %v1600_v30 = vsel %vm340_vm0, %v3922_v0, -inf  ;;  %v3936_v41 = vadd.f32 %v2717_v2, %v2509_v42 }
 0x526   : > { %v3930_v32 = vadd.f32 %v2505_v47, %v1489_v62  ;;  %1592 = vmax.xlane.f32.xlu0 %v1591_v28  ;;  %1601 = vmax.xlane.f32.xlu1 %v1600_v30  ;;  %v1594_v43 = vsel %vm340_vm0, %v3924_v4, -inf  ;;  %v1615_v10 = vsel %vm340_vm0, %v3948_v25, -inf  ;;  %v3054_v47 = vld [vmem:[#allocation2] sm:$0xff] }
 0x527   : > { %v1603_v48 = vsel %vm340_vm0, %v3936_v41, -inf }
 0x528   : > { %v1597_v26 = vsel %vm340_vm0, %v3930_v32, -inf }
 0x52a   : > { %1598 = vmax.xlane.f32.xlu0 %v1597_v26  ;;  %1595 = vmax.xlane.f32.xlu1 %v1594_v43 }
 0x52e   : > { %1604 = vmax.xlane.f32.xlu0 %v1603_v48  ;;  %1607 = vmax.xlane.f32.xlu1 %v1606_v49 }
 0x532   : > { %1610 = vmax.xlane.f32.xlu0 %v1609_v20  ;;  %1613 = vmax.xlane.f32.xlu1 %v1612_v40 }
 0x536   : > { %1616 = vmax.xlane.f32.xlu0 %v1615_v10 }
 0x543   : > { %1754 = vrot.lane.b32.xlu1 %v3054_v47, %s3261_s9 }
 0x547   : > { %1756 = vrot.lane.b32.xlu1 %v3560_v57, %s3261_s9 }
 0x59f   : > { %v1590_v42 = vpop.xlane.xlu1 %1589 }
 0x5a0   : > { %v1624_v39 = vsub.f32 %v3892_v23, %v1590_v42 }
 0x5a2   : > { %v1646_v36 = vmul.f32 1.442695, %v1624_v39 }
 0x5a3   : > { %v1584_v21 = vpop.xlane.xlu1 %1583  ;;  %v1578_v61 = vpop.xlane.xlu0 %1577 }
 0x5a4   : > { %2990 = vpow2.f32 %v1646_v36  ;;  %v1622_v56 = vsub.f32 %v3894_v37, %v1584_v21  ;;  %v1620_v59 = vsub.f32 %v3898_v55, %v1578_v61 }
 0x5a6   : > { %v1638_v52 = vmul.f32 1.442695, %v1620_v59  ;;  %v1642_v45 = vmul.f32 1.442695, %v1622_v56 }
 0x5a7   : > { %v1572_v54 = vpop.xlane.xlu0 %1571  ;;  %v1575_v23 = vpop.xlane.xlu1 %1574 }
 0x5a8   : > { %v1618_v50 = vsub.f32 %v3900_v34, %v1572_v54  ;;  %2992 = vpow2.f32 %v1638_v52  ;;  %v1619_v61 = vsub.f32 %v3906_v29, %v1575_v23 }
 0x5a9   : > { %2994 = vpow2.f32 %v1642_v45 }
 0x5aa   : > { %v1634_v2 = vmul.f32 1.442695, %v1618_v50 }
 0x5ab   : > { %v1581_v57 = vpop.xlane.xlu0 %1580 }
 0x5ac   : > { %2996 = vpow2.f32 %v1634_v2  ;;  %v1621_v55 = vsub.f32 %v3910_v58, %v1581_v57 }
 0x5ae   : > { %v3963_v62 = vpop.eup %2990  ;;  %v1640_v47 = vmul.f32 1.442695, %v1621_v55 }
 0x5af   : > { %v1587_v28 = vpop.xlane.xlu0 %1586  ;;  %v1684_v30 = vsel %vm340_vm0, %v3963_v62, 0.0 }
 0x5b0   : > { %1685 = vadd.xlane.f32.xlu1 %v1684_v30  ;;  %v1623_v42 = vsub.f32 %v3914_v44, %v1587_v28 }
 0x5b2   : > { %v3967_v37 = vpop.eup %2992  ;;  %v1644_v56 = vmul.f32 1.442695, %v1623_v42 }
 0x5b3   : > { %v1602_v26 = vpop.xlane.xlu1 %1601  ;;  %v1593_v43 = vpop.xlane.xlu0 %1592  ;;  %v1672_v49 = vsel %vm340_vm0, %v3967_v37, 0.0 }
 0x5b4   : > { %v1628_v34 = vsub.f32 %v3922_v0, %v1602_v26  ;;  %v1625_v48 = vsub.f32 %v3918_v60, %v1593_v43  ;;  %v3974_v20 = vpop.eup %2994  ;;  %1673 = vadd.xlane.f32.xlu1 %v1672_v49 }
 0x5b5   : > { %v1678_v60 = vsel %vm340_vm0, %v3974_v20, 0.0 }
 0x5b6   : > { %v1654_v40 = vmul.f32 1.442695, %v1628_v34  ;;  %v1648_v10 = vmul.f32 1.442695, %v1625_v48  ;;  %v3982_v0 = vpop.eup %2996 }
 0x5b7   : > { %v1596_v39 = vpop.xlane.xlu1 %1595  ;;  %v3977_v36 = vpop.xlane.xlu0 %1598  ;;  %v1666_v52 = vsel %vm340_vm0, %v3982_v0, 0.0 }
 0x5b8   : > { %2998 = vpow2.f32 %v1654_v40  ;;  %v1626_v58 = vsub.f32 %v3924_v4, %v1596_v39  ;;  %1679 = vadd.xlane.f32.xlu1 %v1678_v60  ;;  %v1636_v4 = vmul.f32 1.442695, %v1619_v61 }
 0x5b9   : > { %3000 = vpow2.f32 %v1648_v10 }
 0x5ba   : > { %v1650_v21 = vmul.f32 1.442695, %v1626_v58  ;;  %3002 = vpow2.f32 %v1640_v47 }
 0x5bb   : > { %v1608_v59 = vpop.xlane.xlu1 %1607  ;;  %v1605_v44 = vpop.xlane.xlu0 %1604 }
 0x5bc   : > { %3004 = vpow2.f32 %v1650_v21  ;;  %1667 = vadd.xlane.f32.xlu1 %v1666_v52  ;;  %v1630_v29 = vsub.f32 %v3934_v31, %v1608_v59  ;;  %v1629_v47 = vsub.f32 %v3936_v41, %v1605_v44  ;;  %v1627_v41 = vsub.f32 %v3930_v32, %v3977_v36 }
 0x5bd   : > { %3006 = vpow2.f32 %v1644_v56 }
 0x5be   : > { %3008 = vpow2.f32 %v1636_v4  ;;  %v1658_v34 = vmul.f32 1.442695, %v1630_v29  ;;  %v1656_v58 = vmul.f32 1.442695, %v1629_v47  ;;  %v1652_v52 = vmul.f32 1.442695, %v1627_v41 }
 0x5bf   : > { %v1614_v45 = vpop.xlane.xlu1 %1613  ;;  %v1611_v54 = vpop.xlane.xlu0 %1610 }
 0x5c0   : > { %v1632_v50 = vsub.f32 %v3940_v35, %v1614_v45  ;;  %v1631_v60 = vsub.f32 %v3942_v53, %v1611_v54  ;;  %v3055_v45 = vld [vmem:[#allocation2 + $0x18] sm:$0xff]  ;;  %v3056_v54 = vld [vmem:[#allocation2 + $0x20] sm:$0xff] }
 0x5c2   : > { %v3988_v2 = vpop.eup %2998  ;;  %v1662_v23 = vmul.f32 1.442695, %v1632_v50  ;;  %v1660_v56 = vmul.f32 1.442695, %v1631_v60 }
 0x5c3   : > { %v3990_v57 = vpop.eup %3000  ;;  %v1755_v28 = vpop.permute.xlu1 %1754  ;;  %v1696_v30 = vsel %vm340_vm0, %v3988_v2, 0.0 }
 0x5c4   : > { %v1617_v55 = vpop.xlane.xlu0 %1616  ;;  %2726 = vmatprep.subr.bf16.mxu0 %v1755_v28  ;;  %1697 = vadd.xlane.f32.xlu1 %v1696_v30  ;;  %v1687_v26 = vsel %vm340_vm0, %v3990_v57, 0.0  ;;  %v3997_v43 = vpop.eup %3002  ;;  %3010 = vpow2.f32 %v1662_v23  ;;  %v3057_v23 = vld [vmem:[#allocation2 + $0x28] sm:$0xff] }
 0x5c5   : > { %1688 = vadd.xlane.f32.xlu0 %v1687_v26  ;;  %2727 = vmatpush3.bf16.msra.mxu0 %v1755_v28  ;;  %v1633_v31 = vsub.f32 %v3948_v25, %v1617_v55  ;;  %v1675_v40 = vsel %vm340_vm0, %v3997_v43, 0.0  ;;  %3012 = vpow2.f32 %v1658_v34  ;;  %v3058_v55 = vld [vmem:[#allocation2 + $0x30] sm:$0xff]  ;;  %v3059_v34 = vld [vmem:[#allocation2 + $0x38] sm:$0xff] }
 0x5c6   : > { %v3999_v35 = vpop.eup %3004 }
 0x5c7   : > { %v1757_v48 = vpop.permute.xlu1 %1756  ;;  %v1690_v49 = vsel %vm340_vm0, %v3999_v35, 0.0  ;;  %v4006_v10 = vpop.eup %3006  ;;  %v1664_v42 = vmul.f32 1.442695, %v1633_v31  ;;  %v3060_v31 = vld [vmem:[#allocation2 + $0x10] sm:$0xff] }
 0x5c8   : > { %2728 = vmatprep.subr.bf16.mxu0 %v1757_v48  ;;  %1691 = vadd.xlane.f32.xlu1 %v1690_v49  ;;  %v1681_v25 = vsel %vm340_vm0, %v4006_v10, 0.0  ;;  %v4011_v39 = vpop.eup %3008 }
 0x5c9   : > { %1676 = vadd.xlane.f32.xlu0 %v1675_v40  ;;  %2729 = vmatpush3.bf16.msra.mxu0 %v1757_v48  ;;  %3014 = vpow2.f32 %v1664_v42  ;;  %v1669_v21 = vsel %vm340_vm0, %v4011_v39, 0.0 }
 0x5ca   : > { %3016 = vpow2.f32 %v1656_v58 }
 0x5cb   : > { %3018 = vpow2.f32 %v1660_v56 }
 0x5cc   : > { %3020 = vpow2.f32 %v1652_v52 }
 0x5cd   : > { %1682 = vadd.xlane.f32.xlu0 %v1681_v25 }
 0x5ce   : > { %v4016_v61 = vpop.eup %3010 }
 0x5cf   : > { %v1708_v59 = vsel %vm340_vm0, %v4016_v61, 0.0  ;;  %v4022_v44 = vpop.eup %3012 }
 0x5d0   : > { %v1702_v53 = vsel %vm340_vm0, %v4022_v44, 0.0 }
 0x5d1   : > { %1670 = vadd.xlane.f32.xlu0 %v1669_v21 }
 0x5d3   : > { %v4026_v4 = vpop.eup %3014 }
 0x5d4   : > { %v1711_v32 = vsel %vm340_vm0, %v4026_v4, 0.0  ;;  %v4031_v36 = vpop.eup %3016 }
 0x5d5   : > { %1709 = vadd.xlane.f32.xlu0 %v1708_v59  ;;  %v1699_v50 = vsel %vm340_vm0, %v4031_v36, 0.0  ;;  %v4036_v29 = vpop.eup %3018 }
 0x5d6   : > { %v1705_v28 = vsel %vm340_vm0, %v4036_v29, 0.0  ;;  %v4041_v30 = vpop.eup %3020 }
 0x5d7   : > { %v1693_v26 = vsel %vm340_vm0, %v4041_v30, 0.0 }
 0x5d9   : > { %1703 = vadd.xlane.f32.xlu0 %v1702_v53  ;;  %1817 = vrot.lane.b32.xlu1 %v3055_v45, %s3261_s9 }
 0x5dd   : > { %1712 = vadd.xlane.f32.xlu0 %v1711_v32  ;;  %1876 = vrot.lane.b32.xlu1 %v3056_v54, %s3261_s9 }
 0x5e1   : > { %1700 = vadd.xlane.f32.xlu0 %v1699_v50  ;;  %1878 = vrot.lane.b32.xlu1 %v3057_v23, %s3261_s9 }
 0x5e5   : > { %1706 = vadd.xlane.f32.xlu0 %v1705_v28  ;;  %1937 = vrot.lane.b32.xlu1 %v3058_v55, %s3261_s9 }
 0x5e9   : > { %1694 = vadd.xlane.f32.xlu0 %v1693_v26  ;;  %1939 = vrot.lane.b32.xlu1 %v3059_v34, %s3261_s9 }
 0x5ff   : > { %1815 = vrot.lane.b32.xlu0 %v3060_v31, %s3261_s9 }
 0x63d   : > { %v1686_v48 = vpop.xlane.xlu1 %1685 }
 0x641   : > { %v1674_v49 = vpop.xlane.xlu1 %1673 }
 0x645   : > { %v1680_v40 = vpop.xlane.xlu1 %1679 }
 0x646   : > { %3022 = vrcp.f32 %v1680_v40 }
 0x649   : > { %v1668_v47 = vpop.xlane.xlu1 %1667 }
 0x650   : > { %v3023_v53 = vpop.eup %3022 }
 0x651   : > { %v1698_v42 = vpop.xlane.xlu1 %1697  ;;  %v1734_v50 = vmul.f32 %v3023_v53, %v3974_v20 }
 0x652   : > { %v1689_v25 = vpop.xlane.xlu0 %1688 }
 0x655   : > { %v1692_v58 = vpop.xlane.xlu1 %1691 }
 0x656   : > { %v1677_v60 = vpop.xlane.xlu0 %1676 }
 0x659   : > { %v4048_v21 = vpop.permute.xlu1 %1817 }
 0x65a   : > { %v1683_v41 = vpop.xlane.xlu0 %1682 }
 0x65b   : > { %3024 = vrcp.f32 %v1683_v41 }
 0x65c   : > { %3026 = vrcp.f32 %v1677_v60 }
 0x65d   : > { %3028 = vrcp.f32 %v1668_v47  ;;  %v1877_v56 = vpop.permute.xlu1 %1876 }
 0x65e   : > { %3030 = vrcp.f32 %v1674_v49  ;;  %v1671_v59 = vpop.xlane.xlu0 %1670  ;;  %2742 = vmatprep.subr.bf16.mxu0 %v1877_v56 }
 0x65f   : > { %3032 = vrcp.f32 %v1671_v59 }
 0x660   : > { %3034 = vrcp.f32 %v1689_v25 }
 0x661   : > { %3036 = vrcp.f32 %v1686_v48 }
 0x662   : > { %v1710_v52 = vpop.xlane.xlu0 %1709 }
 0x665   : > { %v3025_v45 = vpop.eup %3024 }
 0x666   : > { %v3027_v32 = vpop.eup %3026  ;;  %v1704_v54 = vpop.xlane.xlu0 %1703  ;;  %v1735_v23 = vmul.f32 %v3025_v45, %v4006_v10 }
 0x667   : > { %v3029_v28 = vpop.eup %3028  ;;  %v1733_v31 = vmul.f32 %v3027_v32, %v3997_v43  ;;  %v1879_v10 = vpop.permute.xlu1 %1878  ;;  %v2924_v43 = vld [vmem:[#allocation9] sm:$0xff]   ;;  %3038 = vrcp.f32 %v1704_v54 }
 0x668   : > { %v3031_v55 = vpop.eup %3030  ;;  %v1748_v26 = vpack.c.bf16 %v1735_v23, %v1734_v50  ;;  %v1730_v40 = vmul.f32 %v3029_v28, %v3982_v0 }
 0x669   : > { %v3033_v34 = vpop.eup %3032  ;;  %v1732_v60 = vmul.f32 %v3031_v55, %v3967_v37 }
 0x66a   : > { %2738 = vmatprep.mubr.msk.bf16.mxu1 %vm340_vm0, %v1748_v26  ;;  %v1713_v49 = vpop.xlane.xlu0 %1712  ;;  %v1731_v47 = vmul.f32 %v3033_v34, %v4011_v39  ;;  %v3035_v0 = vpop.eup %3034 }
 0x66b   : > { %v1747_v59 = vpack.c.bf16 %v1733_v31, %v1732_v60  ;;  %v3037_v25 = vpop.eup %3036  ;;  %v1737_v45 = vmul.f32 %v3035_v0, %v3990_v57  ;;  %v1938_v54 = vpop.permute.xlu1 %1937 }
 0x66c   : > { %v1746_v41 = vpack.c.bf16 %v1731_v47, %v1730_v40  ;;  %v1736_v50 = vmul.f32 %v3037_v25, %v3963_v62 }
 0x66e   : > { %2730 = vmatprep.mubr.msk.bf16.mxu0 %vm340_vm0, %v1746_v41  ;;  %v1701_v20 = vpop.xlane.xlu0 %1700  ;;  %v1749_v26 = vpack.c.bf16 %v1737_v45, %v1736_v50 }
 0x66f   : > { %2731 = vmatmul.mubr.msk.bf16.vlgmr.msra.gmra.mrb[32].mxu0 %vm340_vm0, %v1747_v59  ;;  %v1940_v40 = vpop.permute.xlu1 %1939 }
 0x670   : > { %2743 = vmatpush3.bf16.msra.mxu0 %v1877_v56 }
 0x671   : > { %2744 = vmatprep.subr.bf16.mxu0 %v1879_v10  ;;  %v3039_v56 = vpop.eup %3038 }
 0x672   : > { %v1707_v53 = vpop.xlane.xlu0 %1706 }
 0x673   : > { %3040 = vrcp.f32 %v1707_v53 }
 0x674   : > { %3042 = vrcp.f32 %v1701_v20  ;;  %2745 = vmatpush3.bf16.msra.mxu0 %v1879_v10 }
 0x675   : > { %3044 = vrcp.f32 %v1692_v58  ;;  %2776 = vmatprep.subr.bf16.mxu0 %v2924_v43 }
 0x676   : > { %3046 = vrcp.f32 %v1698_v42  ;;  %v1695_v37 = vpop.xlane.xlu0 %1694 }
 0x677   : > { %3048 = vrcp.f32 %v1695_v37 }
 0x678   : > { %3050 = vrcp.f32 %v1713_v49 }
 0x679   : > { %3052 = vrcp.f32 %v1710_v52  ;;  %v1742_v52 = vmul.f32 %v3039_v56, %v4022_v44 }
 0x67a   : > { %v1816_v39 = vpop.permute.xlu0 %1815 }
 0x67b   : > { %2734 = vmatprep.subr.bf16.mxu1 %v1816_v39 }
 0x67c   : > { %2735 = vmatpush3.bf16.msra.mxu1 %v1816_v39 }
 0x67d   : > { %v3041_v48 = vpop.eup %3040  ;;  %2736 = vmatprep.subr.bf16.mxu1 %v4048_v21 }
 0x67e   : > { %v3043_v32 = vpop.eup %3042  ;;  %v1743_v58 = vmul.f32 %v3041_v48, %v4036_v29 }
 0x67f   : > { %v3045_v42 = vpop.eup %3044  ;;  %v1741_v55 = vmul.f32 %v3043_v32, %v4031_v36 }
 0x680   : > { %v3047_v23 = vpop.eup %3046  ;;  %2737 = vmatpush3.bf16.msra.mxu1 %v4048_v21  ;;  %v1752_v34 = vpack.c.bf16 %v1743_v58, %v1742_v52  ;;  %v1738_v31 = vmul.f32 %v3045_v42, %v3999_v35 }
 0x681   : > { %v3049_v28 = vpop.eup %3048  ;;  %2750 = vmatprep.subr.bf16.mxu1 %v1938_v54  ;;  %v1740_v29 = vmul.f32 %v3047_v23, %v3988_v2 }
 0x682   : > { %v3051_v57 = vpop.eup %3050  ;;  %v1739_v49 = vmul.f32 %v3049_v28, %v4041_v30 }
 0x683   : > { %2739 = vmatmul.mubr.msk.bf16.vlgmr.msra.gmra.mrb[32].mxu1 %vm340_vm0, %v1749_v26  ;;  %v3053_v62 = vpop.eup %3052  ;;  %v1745_v36 = vmul.f32 %v3051_v57, %v4026_v4  ;;  %v1751_v21 = vpack.c.bf16 %v1741_v55, %v1740_v29 }
 0x684   : > { %2751 = vmatpush3.bf16.msra.mxu1 %v1938_v54  ;;  %2754 = vmatprep.mubr.msk.bf16.mxu1 %vm340_vm0, %v1752_v34  ;;  %v1750_v44 = vpack.c.bf16 %v1739_v49, %v1738_v31  ;;  %v1744_v35 = vmul.f32 %v3053_v62, %v4016_v61 }
 0x685   : > { %2752 = vmatprep.subr.bf16.mxu1 %v1940_v40 }
 0x686   : > { %2746 = vmatprep.mubr.msk.bf16.mxu0 %vm340_vm0, %v1750_v44  ;;  %v1753_v2 = vpack.c.bf16 %v1745_v36, %v1744_v35 }
 0x687   : > { %2747 = vmatmul.mubr.msk.bf16.vlgmr.msra.gmra.mrb[36].mxu0 %vm340_vm0, %v1751_v21 }
 0x688   : > { %2753 = vmatpush3.bf16.msra.mxu1 %v1940_v40  ;;  %2778 = vmatprep.mubr.msk.bf16.mxu0 %vm584_vm2, %v1275_v51 }
 0x689   : > { %2777 = vmatpush3.bf16.msra.mxu0 %v2924_v43  ;;  %2758 = vmatprep.subr.bf16.mxu1 %v2925_v8 }
 0x68b   : > { %2755 = vmatmul.mubr.msk.bf16.vlgmr.msra.gmra.mrb[36].mxu1 %vm340_vm0, %v1753_v2 }
 0x68c   : > { %2759 = vmatpush3.bf16.msra.mxu1 %v2925_v8 }
 0x68f   : > { %2779 = vmatmul.mubr.msk.bf16.vlgmr.msra.gmra.mrb[40].mxu0 %vm584_vm2, %v1276_v17 }
 0x690   : > { %2782 = vmatprep.mubr.msk.bf16.mxu0 %vm584_vm2, %v1277_v13 }
 0x697   : > { %2783 = vmatmul.mubr.msk.bf16.gmra.mrb[44].mxu0 %vm584_vm2, %v1278_v1 }
 0x698   : > { %2786 = vmatprep.mubr.msk.bf16.mxu0 %vm584_vm2, %v1279_v27 }
 0x69f   : > { %2787 = vmatmul.mubr.msk.bf16.gmra.mrb[48].mxu0 %vm584_vm2, %v1280_v19 }
 0x6a0   : > { %2790 = vmatprep.mubr.msk.bf16.mxu0 %vm584_vm2, %v1281_v15 }
 0x6a7   : > { %2791 = vmatmul.mubr.msk.bf16.gmra.mrb[52].mxu0 %vm584_vm2, %v1282_v33 }
 0x742   : > { %v2732_v9 = vpop.f32.mrb[32].mxu0 }
 0x743   : > { %v1800_v11 = vpop.f32.mrb[33].mxu0 }
 0x744   : > { %v2733_v1 = vpop.f32.mrb[34].mxu0 }
 0x745   : > { %v1999_v12 = vpack.c.bf16 %v2733_v1, %v2732_v9  ;;  %v1803_v13 = vpop.f32.mrb[35].mxu0 }
 0x746   : > { %v1998_v14 = vpack.c.bf16 %v1803_v13, %v1800_v11 }
 0x748   : > { %2760 = vmatprep.mubr.msk.bf16.mxu1 %vm584_vm2, %v1998_v14 }
 0x749   : > { %2761 = vmatmul.mubr.msk.bf16.vlgmr.msra.gmra.mrb[40].mxu1 %vm584_vm2, %v1999_v12 }
 0x756   : > { %v2740_v16 = vpop.f32.mrb[32].mxu1 }
 0x757   : > { %v1861_v3 = vpop.f32.mrb[33].mxu1 }
 0x758   : > { %v2741_v17 = vpop.f32.mrb[34].mxu1 }
 0x759   : > { %v2001_v18 = vpack.c.bf16 %v2741_v17, %v2740_v16  ;;  %v1864_v51 = vpop.f32.mrb[35].mxu1 }
 0x75a   : > { %v2000_v5 = vpack.c.bf16 %v1864_v51, %v1861_v3  ;;  %v2748_v22 = vpop.f32.mrb[36].mxu0 }
 0x75b   : > { %v1922_v46 = vpop.f32.mrb[37].mxu0 }
 0x75c   : > { %v2749_v33 = vpop.f32.mrb[38].mxu0  ;;  %2764 = vmatprep.mubr.msk.bf16.mxu1 %vm584_vm2, %v2000_v5 }
 0x75d   : > { %v2003_v6 = vpack.c.bf16 %v2749_v33, %v2748_v22  ;;  %v1925_v15 = vpop.f32.mrb[39].mxu0  ;;  %2765 = vmatmul.mubr.msk.bf16.gmra.mrb[44].mxu1 %vm584_vm2, %v2001_v18 }
 0x75e   : > { %v2002_v24 = vpack.c.bf16 %v1925_v15, %v1922_v46  ;;  %v2756_v38 = vpop.f32.mrb[36].mxu1 }
 0x75f   : > { %v1983_v63 = vpop.f32.mrb[37].mxu1 }
 0x760   : > { %v2757_v19 = vpop.f32.mrb[38].mxu1  ;;  %2768 = vmatprep.mubr.msk.bf16.mxu1 %vm584_vm2, %v2002_v24 }
 0x761   : > { %v2005_v7 = vpack.c.bf16 %v2757_v19, %v2756_v38  ;;  %v1986_v27 = vpop.f32.mrb[39].mxu1 }
 0x762   : > { %v2004_v61 = vpack.c.bf16 %v1986_v27, %v1983_v63  ;;  %v2780_v4 = vpop.f32.mrb[40].mxu0 }
 0x763   : > { %v2200_v30 = vpop.f32.mrb[41].mxu0 }
 0x764   : > { %v2781_v47 = vpop.f32.mrb[42].mxu0 }
 0x765   : > { %2769 = vmatmul.mubr.msk.bf16.gmra.mrb[48].mxu1 %vm584_vm2, %v2003_v6  ;;  %v2203_v60 = vpop.f32.mrb[43].mxu0 }
 0x766   : > { %2772 = vmatprep.mubr.msk.bf16.mxu1 %vm584_vm2, %v2004_v61 }
 0x76a   : > { %v2784_v41 = vpop.f32.mrb[44].mxu0 }
 0x76b   : > { %v2216_v59 = vpop.f32.mrb[45].mxu0 }
 0x76c   : > { %v2785_v20 = vpop.f32.mrb[46].mxu0 }
 0x76d   : > { %2773 = vmatmul.mubr.msk.bf16.gmra.mrb[52].mxu1 %vm584_vm2, %v2005_v7  ;;  %v2219_v10 = vpop.f32.mrb[47].mxu0 }
 0x772   : > { %v2788_v43 = vpop.f32.mrb[48].mxu0 }
 0x773   : > { %v2232_v53 = vpop.f32.mrb[49].mxu0 }
 0x774   : > { %v2789_v37 = vpop.f32.mrb[50].mxu0 }
 0x775   : > { %v2235_v0 = vpop.f32.mrb[51].mxu0 }
 0x77a   : > { %v2792_v39 = vpop.f32.mrb[52].mxu0 }
 0x77b   : > { %v2248_v25 = vpop.f32.mrb[53].mxu0 }
 0x77c   : > { %v2793_v56 = vpop.f32.mrb[54].mxu0 }
 0x77d   : > { %v2251_v48 = vpop.f32.mrb[55].mxu0 }
 0x81c   : > { %v2762_v45 = vpop.f32.mrb[40].mxu1 }
 0x81d   : > { %v2209_v32 = vadd.f32 %v2780_v4, %v2762_v45  ;;  %v2073_v54 = vpop.f32.mrb[41].mxu1 }
 0x81e   : > { %v2201_v58 = vadd.f32 %v2200_v30, %v2073_v54  ;;  %v2763_v42 = vpop.f32.mrb[42].mxu1 }
 0x81f   : > { %2265 = vst.msk [vmem:[%s4117_s17 + $0x10] sm:$0xff] %vm340_vm0, %v2209_v32  ;;  %v2212_v50 = vadd.f32 %v2781_v47, %v2763_v42  ;;  %v2076_v23 = vpop.f32.mrb[43].mxu1 }
 0x820   : > { %2263 = vst.msk [vmem:[%s4117_s17] sm:$0xff] %vm340_vm0, %v2201_v58  ;;  %v2204_v52 = vadd.f32 %v2203_v60, %v2076_v23 }
 0x821   : > { %2266 = vst.msk [vmem:[%s4117_s17 + $0x18] sm:$0xff] %vm340_vm0, %v2212_v50 }
 0x822   : > { %2264 = vst.msk [vmem:[%s4117_s17 + $0x8] sm:$0xff] %vm340_vm0, %v2204_v52 }
 0x830   : > { %v2766_v28 = vpop.f32.mrb[44].mxu1 }
 0x831   : > { %v2225_v55 = vadd.f32 %v2784_v41, %v2766_v28  ;;  %v2089_v26 = vpop.f32.mrb[45].mxu1 }
 0x832   : > { %v2217_v57 = vadd.f32 %v2216_v59, %v2089_v26  ;;  %v2767_v34 = vpop.f32.mrb[46].mxu1 }
 0x833   : > { %2269 = vst.msk [vmem:[%s4117_s17 + $0x30] sm:$0xff] %vm340_vm0, %v2225_v55  ;;  %v2228_v31 = vadd.f32 %v2785_v20, %v2767_v34  ;;  %v2092_v49 = vpop.f32.mrb[47].mxu1 }
 0x834   : > { %2267 = vst.msk [vmem:[%s4117_s17 + $0x20] sm:$0xff] %vm340_vm0, %v2217_v57  ;;  %v2220_v29 = vadd.f32 %v2219_v10, %v2092_v49 }
 0x835   : > { %2270 = vst.msk [vmem:[%s4117_s17 + $0x38] sm:$0xff] %vm340_vm0, %v2228_v31 }
 0x836   : > { %2268 = vst.msk [vmem:[%s4117_s17 + $0x28] sm:$0xff] %vm340_vm0, %v2220_v29 }
 0x838   : > { %v2770_v62 = vpop.f32.mrb[48].mxu1 }
 0x839   : > { %v2241_v40 = vadd.f32 %v2788_v43, %v2770_v62  ;;  %v2105_v44 = vpop.f32.mrb[49].mxu1 }
 0x83a   : > { %v2233_v36 = vadd.f32 %v2232_v53, %v2105_v44  ;;  %v2771_v21 = vpop.f32.mrb[50].mxu1 }
 0x83b   : > { %2273 = vst.msk [vmem:[%s4117_s17 + $0x50] sm:$0xff] %vm340_vm0, %v2241_v40  ;;  %v2244_v35 = vadd.f32 %v2789_v37, %v2771_v21  ;;  %v2108_v2 = vpop.f32.mrb[51].mxu1 }
 0x83c   : > { %2271 = vst.msk [vmem:[%s4117_s17 + $0x40] sm:$0xff] %vm340_vm0, %v2233_v36  ;;  %v2236_v8 = vadd.f32 %v2235_v0, %v2108_v2 }
 0x83d   : > { %2274 = vst.msk [vmem:[%s4117_s17 + $0x58] sm:$0xff] %vm340_vm0, %v2244_v35 }
 0x83e   : > { %2272 = vst.msk [vmem:[%s4117_s17 + $0x48] sm:$0xff] %vm340_vm0, %v2236_v8 }
 0x840   : > { %v2774_v9 = vpop.f32.mrb[52].mxu1 }
 0x841   : > { %v2257_v11 = vadd.f32 %v2792_v39, %v2774_v9  ;;  %v2121_v1 = vpop.f32.mrb[53].mxu1 }
 0x842   : > { %v2249_v12 = vadd.f32 %v2248_v25, %v2121_v1  ;;  %v2775_v13 = vpop.f32.mrb[54].mxu1 }
 0x843   : > { %2277 = vst.msk [vmem:[%s4117_s17 + $0x70] sm:$0xff] %vm340_vm0, %v2257_v11  ;;  %v2260_v14 = vadd.f32 %v2793_v56, %v2775_v13  ;;  %v2124_v16 = vpop.f32.mrb[55].mxu1 }
 0x844   : > { %2275 = vst.msk [vmem:[%s4117_s17 + $0x60] sm:$0xff] %vm340_vm0, %v2249_v12  ;;  %v2252_v3 = vadd.f32 %v2251_v48, %v2124_v16 }
 0x845   : > { %2278 = vst.msk [vmem:[%s4117_s17 + $0x78] sm:$0xff] %vm340_vm0, %v2260_v14 }
 0x846   : > { %2276 = vst.msk [vmem:[%s4117_s17 + $0x68] sm:$0xff] %vm340_vm0, %v2252_v3 }
 0x847   : > { %3188 = shalt.err (!%p3185_p4)
}
 0x848   : > { %s3189_s16 = scalar_lea.hbm %s4150_s24, 2048  ;;  %s3193_s9 = scalar_lea.hbm %s4207_s5, 4096 }
 0x849   : > { %p3190_p9 = scmp.ne.s32.totalorder %s4150_s24, %s3189_s16  ;;  %p3194_p8 = scmp.lt.u32.totalorder %s4150_s24, %s4207_s5 }
 0x84a   : > { %p3195_p13 = scmp.lt.u32.totalorder %s3193_s9, %s3189_s16  ;;  %p3197_p10 = scmp.lt.u32.totalorder %s3189_s16, %s4150_s24 }
 0x84b   : > { %p3191_p0 = pnand %p3190_p9, %p3449_p5 }
 0x84c   : > { %p3196_p6 = por %p3195_p13, %p3194_p8 }
 0x84d   : > { %p3192_p11 = pneg %p3191_p0 }
 0x84e   : > { %p3198_p3 = por %p3197_p10, %p3196_p6 }
 0x850   : > { %p3199_p7 = pnand %p3198_p3, %p3192_p11 }
 0x852   : > { %3202 = shalt.err (!%p3199_p7)
}
 0x853   : > { %s3263_s10 = smov 128   ;;  %s3264_s11 = smov 8  }
 0x854   : > { %2840 = dma.vmem_to_hbm [thread:$0]  (%p3449_p5), %s4152_s8, 2048, %s4150_s24, %s2280_s22, %s3263_s10, %s3263_s10, %s3264_s11  }
 0x855 PF: > { %s2309_s12 = sand.u32 1, %s3237_s18   ;;  %p4225_p12 = scmp.ne.s32.totalorder %s4212_s25, 0 }
 0x856   : > { %p4226_p1 = scmp.ge.s32.totalorder %s3249_s21, 2  ;;  %s2310_s26 = scalar_lea.sflag [#allocation5], %s2309_s12 }
 0x858   : > { %p2857_p2 = pnand %p4226_p1, %p4225_p12 }
 0x85a   : > { %3232 = dma.done.wait (!%p2857_p2), %s2310_s26, 2048  }
 0x85b   : > { %3234 = vsyncadd (!%p2857_p2), %s2310_s26, 4294965248  ;;  %p20_p4 = scmp.ge.s32.totalorder %s3435_s14, 4   ;;  %s4227_s18 = smov %s3241_s19 }
 0x85c   : > { %s4228_s19 = smov %s3245_s20  ;;  %s4229_s20 = smov %s3445_s30 }
 0x85d   : > { %s4230_s21 = smov %s3435_s14  ;;  %22 = sbr.rel (!%p20_p4) target bundleno = 7 (0x7), region = 100 }
 0x864   :  { %2315 = vsyncpa [#allocation4], 1 }
 0x865   :  { %2317 = vsyncpa [#allocation4 + $0x1], 1 }
 0x866   :  { %2318 = vsyncpa [#allocation7], 1 }
 0x867   :  { %2319 = vsyncpa [#allocation10], 1 }
 0x868   :  { %2320 = vsyncpa [#allocation5], 1 }
 0x869   :  { %2322 = vsyncpa [#allocation5 + $0x1], 1 }

</bundles_post_ra>
